<compile_context>
chip_gen: v6e
topology: v6e:2x2x1
jax: 0.10.0
libtpu: 0.0.40
codegen_flags: <defaults>
</compile_context>

<pallas_src>
import jax
import jax.numpy as jnp
from jax.experimental import pallas as pl
from jax.experimental.pallas import tpu as pltpu


_VMEM = pl.BlockSpec(memory_space=pltpu.MemorySpace.VMEM)
_SMEM = pl.BlockSpec(memory_space=pltpu.MemorySpace.SMEM)


# ---------------------------------------------------------------------------
# Fused decode-step kernel
# ---------------------------------------------------------------------------
def _make_fused_decoder_kernel(n_layers: int, batch: int):
    """Builds the fused decode-step kernel for static (n_layers, batch)."""

    def kernel(*refs):
        (tok_ref,      # SMEM [B]        int32 token ids
         emb_ref,      # VMEM [V, E]     f32 embedding table
         h_in_ref,     # VMEM [L, B, H]  f32
         c_in_ref,     # VMEM [L, B, H]  f32
         cls_w_ref,    # VMEM [H, V]     bf16
         cls_b_ref,    # VMEM [1, V]     f32
         ) = refs[:6]
        layer_refs = refs[6:6 + 3 * n_layers]   # per layer: wih[4,in,H] bf16, whh[4,H,H] bf16, b[4,1,H] f32
        pred_ref, h_out_ref, c_out_ref = refs[6 + 3 * n_layers:]

        # ---- embedding gather: token ids from SMEM, rows from the VMEM table ----
        rows = [emb_ref[pl.ds(tok_ref[b], 1), :] for b in range(batch)]
        x = jnp.concatenate(rows, axis=0)                       # [B, E] f32

        # ---- stacked LSTMCell step (n_layers is tiny & static -> unrolled) ----
        for layer in range(n_layers):
            wih_ref = layer_refs[3 * layer + 0]                 # [4, in_dim, H] bf16
            whh_ref = layer_refs[3 * layer + 1]                 # [4, H, H]      bf16
            b_ref = layer_refs[3 * layer + 2]                   # [4, 1, H]      f32

            h_prev = h_in_ref[layer]                            # [B, H] f32
            c_prev = c_in_ref[layer]                            # [B, H] f32

            x_b = x.astype(jnp.bfloat16)
            h_b = h_prev.astype(jnp.bfloat16)

            # Four lane-contiguous [B, H] gate pre-activations (torch order i, f, g, o);
            # bf16 MXU matmuls with f32 accumulation, elementwise math in f32.
            pre = [jnp.dot(x_b, wih_ref[g], preferred_element_type=jnp.float32)
                   + jnp.dot(h_b, whh_ref[g], preferred_element_type=jnp.float32)
                   + b_ref[g]
                   for g in range(4)]

            i_g = jax.nn.sigmoid(pre[0])
            f_g = jax.nn.sigmoid(pre[1])
            g_g = jnp.tanh(pre[2])
            o_g = jax.nn.sigmoid(pre[3])

            c_new = f_g * c_prev + i_g * g_g
            h_new = o_g * jnp.tanh(c_new)

            h_out_ref[layer] = h_new
            c_out_ref[layer] = c_new
            x = h_new                                           # next layer's input (f32)

        # ---- classifier: Linear(H, V) + LogSoftmax(dim=-1) on the top-layer hidden ----
        logits = (jnp.dot(x.astype(jnp.bfloat16), cls_w_ref[...],
                          preferred_element_type=jnp.float32)
                  + cls_b_ref[...])                             # [B, V] f32
        m = jnp.max(logits, axis=-1, keepdims=True)
        z = logits - m
        lse = jnp.log(jnp.sum(jnp.exp(z), axis=-1, keepdims=True))
        pred_ref[...] = z - lse

    return kernel


# ---------------------------------------------------------------------------
# Wrapper: one pallas_call per decode step
# ---------------------------------------------------------------------------
def _decoder_forward_impl(params, tokens, hidden, cell, encoder_outputs):
    """tokens: [B] int32; hidden/cell: [L, B, H] f32; encoder_outputs unused (as in torch)."""
    del encoder_outputs  # unused by the reference Decoder.forward

    n_layers, batch, hid = hidden.shape
    vocab, _ = params["embedding"].shape

    inputs = [tokens, params["embedding"], hidden, cell,
              params["cls_w"], params["cls_b"]]
    for wih4, whh4, b4 in params["lstm"]:
        inputs.extend([wih4, whh4, b4])

    # Advisory cost estimate so XLA does not treat the custom call as free.
    flops = 2 * batch * hid * vocab
    transcendentals = batch * vocab                     # exp in log-softmax
    for wih4, _, _ in params["lstm"]:
        in_dim = wih4.shape[1]
        flops += 2 * batch * (in_dim + hid) * 4 * hid
        transcendentals += 5 * batch * hid              # 3 sigmoid + 2 tanh per element
    bytes_accessed = sum(int(a.size) * jnp.dtype(a.dtype).itemsize for a in inputs)
    bytes_accessed += (batch * vocab + 2 * n_layers * batch * hid) * 4  # f32 outputs

    out_shape = (jax.ShapeDtypeStruct((batch, vocab), jnp.float32),
                 jax.ShapeDtypeStruct((n_layers, batch, hid), jnp.float32),
                 jax.ShapeDtypeStruct((n_layers, batch, hid), jnp.float32))

    # NOTE: at production vocab/hidden sizes, tile cls_w over V with a grid
    # ('arbitrary' reduction axis + online log-softmax) and set vmem_limit_bytes,
    # especially on v7x (64 MiB VMEM, 2 TensorCores). At these sizes every array fits
    # comfortably in VMEM as a single full-array block, so no grid is used.
    pred, new_hidden, new_cell = pl.pallas_call(
        _make_fused_decoder_kernel(n_layers, batch),
        out_shape=out_shape,
        in_specs=[_SMEM] + [_VMEM] * (len(inputs) - 1),
        out_specs=(_VMEM, _VMEM, _VMEM),
        # Recurrent state updated in place: hidden -> new_hidden, cell -> new_cell (P8).
        input_output_aliases={2: 1, 3: 2},
        cost_estimate=pl.CostEstimate(flops=flops,
                                      transcendentals=transcendentals,
                                      bytes_accessed=bytes_accessed),
    )(*inputs)
    return pred, new_hidden, new_cell


decoder_forward = jax.jit(_decoder_forward_impl)


# ---------------------------------------------------------------------------
# Pure-JAX reference (same bf16-matmul / f32-elementwise recipe) for correctness
# ---------------------------------------------------------------------------
def decoder_forward_ref(params, tokens, hidden, cell, encoder_outputs):
    del encoder_outputs
    x = jnp.take(params["embedding"], tokens, axis=0)           # [B, E] f32
    n_layers = hidden.shape[0]
    hs = [hidden[l] for l in range(n_layers)]
    cs = [cell[l] for l in range(n_layers)]
    for layer in range(n_layers):
        wih4, whh4, b4 = params["lstm"][layer]
        xb = x.astype(jnp.bfloat16)
        hb = hs[layer].astype(jnp.bfloat16)
        pre = [jnp.dot(xb, wih4[g], preferred_element_type=jnp.float32)
               + jnp.dot(hb, whh4[g], preferred_element_type=jnp.float32)
               + b4[g] for g in range(4)]
        i = jax.nn.sigmoid(pre[0])
        f = jax.nn.sigmoid(pre[1])
        g = jnp.tanh(pre[2])
        o = jax.nn.sigmoid(pre[3])
        cs[layer] = f * cs[layer] + i * g
        hs[layer] = o * jnp.tanh(cs[layer])
        x = hs[layer]
    logits = (jnp.dot(x.astype(jnp.bfloat16), params["cls_w"],
                      preferred_element_type=jnp.float32) + params["cls_b"])
    pred = jax.nn.log_softmax(logits, axis=-1)
    return pred, jnp.stack(hs, 0), jnp.stack(cs, 0)


# ---------------------------------------------------------------------------
# Deterministic parameter init (shapes from Decoder.__init__, kernel-friendly layout)
# ---------------------------------------------------------------------------
def init_params(key, output_dim, emb_dim, hid_dim, n_layers):
    keys = jax.random.split(key, 3 + 4 * n_layers)
    params = {}
    params["embedding"] = 0.1 * jax.random.normal(keys[0], (output_dim, emb_dim), jnp.float32)
    lstm = []
    for l in range(n_layers):
        in_dim = emb_dim if l == 0 else hid_dim
        kw = keys[3 + 4 * l: 3 + 4 * (l + 1)]
        # Per-gate, transposed layout: [4 gates (i,f,g,o), in_dim, H]; matmul weights bf16.
        w_ih = 0.1 * jax.random.normal(kw[0], (4, in_dim, hid_dim), jnp.float32)
        w_hh = 0.1 * jax.random.normal(kw[1], (4, hid_dim, hid_dim), jnp.float32)
        b_ih = 0.1 * jax.random.normal(kw[2], (4, 1, hid_dim), jnp.float32)
        b_hh = 0.1 * jax.random.normal(kw[3], (4, 1, hid_dim), jnp.float32)
        lstm.append((w_ih.astype(jnp.bfloat16), w_hh.astype(jnp.bfloat16), b_ih + b_hh))
    params["lstm"] = lstm
    # classifier = Sequential(Linear(hid_dim, output_dim), LogSoftmax)
    params["cls_w"] = (0.1 * jax.random.normal(keys[1], (hid_dim, output_dim), jnp.float32)
                       ).astype(jnp.bfloat16)
    params["cls_b"] = 0.1 * jax.random.normal(keys[2], (1, output_dim), jnp.float32)
    # NOTE: self.fc_out exists in __init__ but is never used in forward -> not materialized.
    return params


if __name__ == "__main__":
    # Small but lane/sublane-friendly shapes (B = 8 sublanes, E/H multiples of 128 lanes).
    V, E, H, L, B, SRC_LEN = 256, 128, 128, 2, 8, 8

    key = jax.random.PRNGKey(0)
    k_par, k_tok, k_h, k_c, k_enc = jax.random.split(key, 5)

    params = init_params(k_par, output_dim=V, emb_dim=E, hid_dim=H, n_layers=L)

    tokens = jax.random.randint(k_tok, (B,), 0, V, dtype=jnp.int32)            # input: [B]
    hidden = 0.1 * jax.random.normal(k_h, (L, B, H), jnp.float32)              # [L, B, H]
    cell = 0.1 * jax.random.normal(k_c, (L, B, H), jnp.float32)                # [L, B, H]
    encoder_outputs = jax.random.normal(k_enc, (SRC_LEN, B, H), jnp.float32)   # unused

    pred, new_h, new_c = decoder_forward(params, tokens, hidden, cell, encoder_outputs)
    jax.block_until_ready((pred, new_h, new_c))

    # Verify against the pure-JAX reference (same mixed-precision recipe).
    pred_r, h_r, c_r = decoder_forward_ref(params, tokens, hidden, cell, encoder_outputs)
    assert pred.shape == (B, V) and new_h.shape == (L, B, H) and new_c.shape == (L, B, H)
    assert jnp.allclose(pred, pred_r, atol=1e-3, rtol=1e-3)
    assert jnp.allclose(new_h, h_r, atol=1e-3, rtol=1e-3)
    assert jnp.allclose(new_c, c_r, atol=1e-3, rtol=1e-3)

    print("KERNEL_OK")
</pallas_src>

<mosaic_0001>
module attributes {stable_mosaic.version = 11 : i64} {
  func.func @kernel(%arg0: memref<8xi32, #tpu.memory_space<smem>>, %arg1: memref<256x128xf32, #tpu.memory_space<vmem>>, %arg2: memref<2x8x128xf32, #tpu.memory_space<vmem>>, %arg3: memref<2x8x128xf32, #tpu.memory_space<vmem>>, %arg4: memref<128x256xbf16, #tpu.memory_space<vmem>>, %arg5: memref<1x256xf32, #tpu.memory_space<vmem>>, %arg6: memref<4x128x128xbf16, #tpu.memory_space<vmem>>, %arg7: memref<4x128x128xbf16, #tpu.memory_space<vmem>>, %arg8: memref<4x1x128xf32, #tpu.memory_space<vmem>>, %arg9: memref<4x128x128xbf16, #tpu.memory_space<vmem>>, %arg10: memref<4x128x128xbf16, #tpu.memory_space<vmem>>, %arg11: memref<4x1x128xf32, #tpu.memory_space<vmem>>, %arg12: memref<8x256xf32, #tpu.memory_space<vmem>>, %arg13: memref<2x8x128xf32, #tpu.memory_space<vmem>>, %arg14: memref<2x8x128xf32, #tpu.memory_space<vmem>>) attributes {dimension_semantics = [], scalar_prefetch = 0 : i64, scratch_operands = 0 : i64, tpu.core_type = #tpu.core_type<tc>} {
    %c0 = arith.constant 0 : index
    %0 = memref.load %arg0[%c0] : memref<8xi32, #tpu.memory_space<smem>>
    %1 = arith.index_cast %0 : i32 to index
    %c0_0 = arith.constant 0 : index
    %2 = vector.load %arg1[%1, %c0_0] : memref<256x128xf32, #tpu.memory_space<vmem>>, vector<1x128xf32>
    %c1 = arith.constant 1 : index
    %3 = memref.load %arg0[%c1] : memref<8xi32, #tpu.memory_space<smem>>
    %4 = arith.index_cast %3 : i32 to index
    %c0_1 = arith.constant 0 : index
    %5 = vector.load %arg1[%4, %c0_1] : memref<256x128xf32, #tpu.memory_space<vmem>>, vector<1x128xf32>
    %c2 = arith.constant 2 : index
    %6 = memref.load %arg0[%c2] : memref<8xi32, #tpu.memory_space<smem>>
    %7 = arith.index_cast %6 : i32 to index
    %c0_2 = arith.constant 0 : index
    %8 = vector.load %arg1[%7, %c0_2] : memref<256x128xf32, #tpu.memory_space<vmem>>, vector<1x128xf32>
    %c3 = arith.constant 3 : index
    %9 = memref.load %arg0[%c3] : memref<8xi32, #tpu.memory_space<smem>>
    %10 = arith.index_cast %9 : i32 to index
    %c0_3 = arith.constant 0 : index
    %11 = vector.load %arg1[%10, %c0_3] : memref<256x128xf32, #tpu.memory_space<vmem>>, vector<1x128xf32>
    %c4 = arith.constant 4 : index
    %12 = memref.load %arg0[%c4] : memref<8xi32, #tpu.memory_space<smem>>
    %13 = arith.index_cast %12 : i32 to index
    %c0_4 = arith.constant 0 : index
    %14 = vector.load %arg1[%13, %c0_4] : memref<256x128xf32, #tpu.memory_space<vmem>>, vector<1x128xf32>
    %c5 = arith.constant 5 : index
    %15 = memref.load %arg0[%c5] : memref<8xi32, #tpu.memory_space<smem>>
    %16 = arith.index_cast %15 : i32 to index
    %c0_5 = arith.constant 0 : index
    %17 = vector.load %arg1[%16, %c0_5] : memref<256x128xf32, #tpu.memory_space<vmem>>, vector<1x128xf32>
    %c6 = arith.constant 6 : index
    %18 = memref.load %arg0[%c6] : memref<8xi32, #tpu.memory_space<smem>>
    %19 = arith.index_cast %18 : i32 to index
    %c0_6 = arith.constant 0 : index
    %20 = vector.load %arg1[%19, %c0_6] : memref<256x128xf32, #tpu.memory_space<vmem>>, vector<1x128xf32>
    %c7 = arith.constant 7 : index
    %21 = memref.load %arg0[%c7] : memref<8xi32, #tpu.memory_space<smem>>
    %22 = arith.index_cast %21 : i32 to index
    %c0_7 = arith.constant 0 : index
    %23 = vector.load %arg1[%22, %c0_7] : memref<256x128xf32, #tpu.memory_space<vmem>>, vector<1x128xf32>
    %24 = tpu.concatenate %2, %5, %8, %11, %14, %17, %20, %23 in 0 : vector<1x128xf32>, vector<1x128xf32>, vector<1x128xf32>, vector<1x128xf32>, vector<1x128xf32>, vector<1x128xf32>, vector<1x128xf32>, vector<1x128xf32> -> vector<8x128xf32>
    %c0_8 = arith.constant 0 : index
    %c0_9 = arith.constant 0 : index
    %c0_10 = arith.constant 0 : index
    %25 = vector.load %arg2[%c0_8, %c0_9, %c0_10] : memref<2x8x128xf32, #tpu.memory_space<vmem>>, vector<1x8x128xf32>
    %26 = vector.shape_cast %25 : vector<1x8x128xf32> to vector<8x128xf32>
    %c0_11 = arith.constant 0 : index
    %c0_12 = arith.constant 0 : index
    %c0_13 = arith.constant 0 : index
    %27 = vector.load %arg3[%c0_11, %c0_12, %c0_13] : memref<2x8x128xf32, #tpu.memory_space<vmem>>, vector<1x8x128xf32>
    %28 = vector.shape_cast %27 : vector<1x8x128xf32> to vector<8x128xf32>
    %29 = arith.truncf %24 : vector<8x128xf32> to vector<8x128xbf16>
    %30 = arith.truncf %26 : vector<8x128xf32> to vector<8x128xbf16>
    %c0_14 = arith.constant 0 : index
    %c0_15 = arith.constant 0 : index
    %c0_16 = arith.constant 0 : index
    %31 = vector.load %arg6[%c0_14, %c0_15, %c0_16] : memref<4x128x128xbf16, #tpu.memory_space<vmem>>, vector<1x128x128xbf16>
    %32 = vector.shape_cast %31 : vector<1x128x128xbf16> to vector<128x128xbf16>
    %cst = arith.constant dense<0.000000e+00> : vector<8x128xf32>
    %33 = tpu.matmul %29, %32, %cst {dimension_numbers = #tpu.dot_dimension_numbers<[1], [0], [0], [1], [0, 0, 1, 1], [], []>} : vector<8x128xbf16>, vector<128x128xbf16>, vector<8x128xf32> -> vector<8x128xf32>
    %c0_17 = arith.constant 0 : index
    %c0_18 = arith.constant 0 : index
    %c0_19 = arith.constant 0 : index
    %34 = vector.load %arg7[%c0_17, %c0_18, %c0_19] : memref<4x128x128xbf16, #tpu.memory_space<vmem>>, vector<1x128x128xbf16>
    %35 = vector.shape_cast %34 : vector<1x128x128xbf16> to vector<128x128xbf16>
    %cst_20 = arith.constant dense<0.000000e+00> : vector<8x128xf32>
    %36 = tpu.matmul %30, %35, %cst_20 {dimension_numbers = #tpu.dot_dimension_numbers<[1], [0], [0], [1], [0, 0, 1, 1], [], []>} : vector<8x128xbf16>, vector<128x128xbf16>, vector<8x128xf32> -> vector<8x128xf32>
    %37 = arith.addf %33, %36 : vector<8x128xf32>
    %c0_21 = arith.constant 0 : index
    %c0_22 = arith.constant 0 : index
    %c0_23 = arith.constant 0 : index
    %38 = vector.load %arg8[%c0_21, %c0_22, %c0_23] : memref<4x1x128xf32, #tpu.memory_space<vmem>>, vector<1x1x128xf32>
    %39 = vector.shape_cast %38 : vector<1x1x128xf32> to vector<1x128xf32>
    %40 = vector.broadcast %39 : vector<1x128xf32> to vector<8x128xf32>
    %41 = arith.addf %37, %40 : vector<8x128xf32>
    %c1_24 = arith.constant 1 : index
    %c0_25 = arith.constant 0 : index
    %c0_26 = arith.constant 0 : index
    %42 = vector.load %arg6[%c1_24, %c0_25, %c0_26] : memref<4x128x128xbf16, #tpu.memory_space<vmem>>, vector<1x128x128xbf16>
    %43 = vector.shape_cast %42 : vector<1x128x128xbf16> to vector<128x128xbf16>
    %cst_27 = arith.constant dense<0.000000e+00> : vector<8x128xf32>
    %44 = tpu.matmul %29, %43, %cst_27 {dimension_numbers = #tpu.dot_dimension_numbers<[1], [0], [0], [1], [0, 0, 1, 1], [], []>} : vector<8x128xbf16>, vector<128x128xbf16>, vector<8x128xf32> -> vector<8x128xf32>
    %c1_28 = arith.constant 1 : index
    %c0_29 = arith.constant 0 : index
    %c0_30 = arith.constant 0 : index
    %45 = vector.load %arg7[%c1_28, %c0_29, %c0_30] : memref<4x128x128xbf16, #tpu.memory_space<vmem>>, vector<1x128x128xbf16>
    %46 = vector.shape_cast %45 : vector<1x128x128xbf16> to vector<128x128xbf16>
    %cst_31 = arith.constant dense<0.000000e+00> : vector<8x128xf32>
    %47 = tpu.matmul %30, %46, %cst_31 {dimension_numbers = #tpu.dot_dimension_numbers<[1], [0], [0], [1], [0, 0, 1, 1], [], []>} : vector<8x128xbf16>, vector<128x128xbf16>, vector<8x128xf32> -> vector<8x128xf32>
    %48 = arith.addf %44, %47 : vector<8x128xf32>
    %c1_32 = arith.constant 1 : index
    %c0_33 = arith.constant 0 : index
    %c0_34 = arith.constant 0 : index
    %49 = vector.load %arg8[%c1_32, %c0_33, %c0_34] : memref<4x1x128xf32, #tpu.memory_space<vmem>>, vector<1x1x128xf32>
    %50 = vector.shape_cast %49 : vector<1x1x128xf32> to vector<1x128xf32>
    %51 = vector.broadcast %50 : vector<1x128xf32> to vector<8x128xf32>
    %52 = arith.addf %48, %51 : vector<8x128xf32>
    %c2_35 = arith.constant 2 : index
    %c0_36 = arith.constant 0 : index
    %c0_37 = arith.constant 0 : index
    %53 = vector.load %arg6[%c2_35, %c0_36, %c0_37] : memref<4x128x128xbf16, #tpu.memory_space<vmem>>, vector<1x128x128xbf16>
    %54 = vector.shape_cast %53 : vector<1x128x128xbf16> to vector<128x128xbf16>
    %cst_38 = arith.constant dense<0.000000e+00> : vector<8x128xf32>
    %55 = tpu.matmul %29, %54, %cst_38 {dimension_numbers = #tpu.dot_dimension_numbers<[1], [0], [0], [1], [0, 0, 1, 1], [], []>} : vector<8x128xbf16>, vector<128x128xbf16>, vector<8x128xf32> -> vector<8x128xf32>
    %c2_39 = arith.constant 2 : index
    %c0_40 = arith.constant 0 : index
    %c0_41 = arith.constant 0 : index
    %56 = vector.load %arg7[%c2_39, %c0_40, %c0_41] : memref<4x128x128xbf16, #tpu.memory_space<vmem>>, vector<1x128x128xbf16>
    %57 = vector.shape_cast %56 : vector<1x128x128xbf16> to vector<128x128xbf16>
    %cst_42 = arith.constant dense<0.000000e+00> : vector<8x128xf32>
    %58 = tpu.matmul %30, %57, %cst_42 {dimension_numbers = #tpu.dot_dimension_numbers<[1], [0], [0], [1], [0, 0, 1, 1], [], []>} : vector<8x128xbf16>, vector<128x128xbf16>, vector<8x128xf32> -> vector<8x128xf32>
    %59 = arith.addf %55, %58 : vector<8x128xf32>
    %c2_43 = arith.constant 2 : index
    %c0_44 = arith.constant 0 : index
    %c0_45 = arith.constant 0 : index
    %60 = vector.load %arg8[%c2_43, %c0_44, %c0_45] : memref<4x1x128xf32, #tpu.memory_space<vmem>>, vector<1x1x128xf32>
    %61 = vector.shape_cast %60 : vector<1x1x128xf32> to vector<1x128xf32>
    %62 = vector.broadcast %61 : vector<1x128xf32> to vector<8x128xf32>
    %63 = arith.addf %59, %62 : vector<8x128xf32>
    %c3_46 = arith.constant 3 : index
    %c0_47 = arith.constant 0 : index
    %c0_48 = arith.constant 0 : index
    %64 = vector.load %arg6[%c3_46, %c0_47, %c0_48] : memref<4x128x128xbf16, #tpu.memory_space<vmem>>, vector<1x128x128xbf16>
    %65 = vector.shape_cast %64 : vector<1x128x128xbf16> to vector<128x128xbf16>
    %cst_49 = arith.constant dense<0.000000e+00> : vector<8x128xf32>
    %66 = tpu.matmul %29, %65, %cst_49 {dimension_numbers = #tpu.dot_dimension_numbers<[1], [0], [0], [1], [0, 0, 1, 1], [], []>} : vector<8x128xbf16>, vector<128x128xbf16>, vector<8x128xf32> -> vector<8x128xf32>
    %c3_50 = arith.constant 3 : index
    %c0_51 = arith.constant 0 : index
    %c0_52 = arith.constant 0 : index
    %67 = vector.load %arg7[%c3_50, %c0_51, %c0_52] : memref<4x128x128xbf16, #tpu.memory_space<vmem>>, vector<1x128x128xbf16>
    %68 = vector.shape_cast %67 : vector<1x128x128xbf16> to vector<128x128xbf16>
    %cst_53 = arith.constant dense<0.000000e+00> : vector<8x128xf32>
    %69 = tpu.matmul %30, %68, %cst_53 {dimension_numbers = #tpu.dot_dimension_numbers<[1], [0], [0], [1], [0, 0, 1, 1], [], []>} : vector<8x128xbf16>, vector<128x128xbf16>, vector<8x128xf32> -> vector<8x128xf32>
    %70 = arith.addf %66, %69 : vector<8x128xf32>
    %c3_54 = arith.constant 3 : index
    %c0_55 = arith.constant 0 : index
    %c0_56 = arith.constant 0 : index
    %71 = vector.load %arg8[%c3_54, %c0_55, %c0_56] : memref<4x1x128xf32, #tpu.memory_space<vmem>>, vector<1x1x128xf32>
    %72 = vector.shape_cast %71 : vector<1x1x128xf32> to vector<1x128xf32>
    %73 = vector.broadcast %72 : vector<1x128xf32> to vector<8x128xf32>
    %74 = arith.addf %70, %73 : vector<8x128xf32>
    %75 = arith.negf %41 : vector<8x128xf32>
    %76 = math.exp %75 : vector<8x128xf32>
    %cst_57 = arith.constant 1.000000e+00 : f32
    %77 = vector.broadcast %cst_57 : f32 to vector<8x128xf32>
    %78 = arith.addf %77, %76 : vector<8x128xf32>
    %79 = arith.divf %77, %78 : vector<8x128xf32>
    %80 = arith.negf %52 : vector<8x128xf32>
    %81 = math.exp %80 : vector<8x128xf32>
    %cst_58 = arith.constant 1.000000e+00 : f32
    %82 = vector.broadcast %cst_58 : f32 to vector<8x128xf32>
    %83 = arith.addf %82, %81 : vector<8x128xf32>
    %84 = arith.divf %82, %83 : vector<8x128xf32>
    %85 = math.tanh %63 : vector<8x128xf32>
    %86 = arith.negf %74 : vector<8x128xf32>
    %87 = math.exp %86 : vector<8x128xf32>
    %cst_59 = arith.constant 1.000000e+00 : f32
    %88 = vector.broadcast %cst_59 : f32 to vector<8x128xf32>
    %89 = arith.addf %88, %87 : vector<8x128xf32>
    %90 = arith.divf %88, %89 : vector<8x128xf32>
    %91 = arith.mulf %84, %28 : vector<8x128xf32>
    %92 = arith.mulf %79, %85 : vector<8x128xf32>
    %93 = arith.addf %91, %92 : vector<8x128xf32>
    %94 = math.tanh %93 : vector<8x128xf32>
    %95 = arith.mulf %90, %94 : vector<8x128xf32>
    %c0_60 = arith.constant 0 : index
    %c0_61 = arith.constant 0 : index
    %c0_62 = arith.constant 0 : index
    %96 = vector.load %arg13[%c0_60, %c0_61, %c0_62] : memref<2x8x128xf32, #tpu.memory_space<vmem>>, vector<1x8x128xf32>
    %97 = vector.shape_cast %96 : vector<1x8x128xf32> to vector<8x128xf32>
    %98 = vector.shape_cast %95 : vector<8x128xf32> to vector<1x8x128xf32>
    tpu.vector_store %arg13[%c0_60, %c0_61, %c0_62], %98 {strides = array<i32>} : memref<2x8x128xf32, #tpu.memory_space<vmem>>, vector<1x8x128xf32>,
    %c0_63 = arith.constant 0 : index
    %c0_64 = arith.constant 0 : index
    %c0_65 = arith.constant 0 : index
    %99 = vector.load %arg14[%c0_63, %c0_64, %c0_65] : memref<2x8x128xf32, #tpu.memory_space<vmem>>, vector<1x8x128xf32>
    %100 = vector.shape_cast %99 : vector<1x8x128xf32> to vector<8x128xf32>
    %101 = vector.shape_cast %93 : vector<8x128xf32> to vector<1x8x128xf32>
    tpu.vector_store %arg14[%c0_63, %c0_64, %c0_65], %101 {strides = array<i32>} : memref<2x8x128xf32, #tpu.memory_space<vmem>>, vector<1x8x128xf32>,
    %c1_66 = arith.constant 1 : index
    %c0_67 = arith.constant 0 : index
    %c0_68 = arith.constant 0 : index
    %102 = vector.load %arg2[%c1_66, %c0_67, %c0_68] : memref<2x8x128xf32, #tpu.memory_space<vmem>>, vector<1x8x128xf32>
    %103 = vector.shape_cast %102 : vector<1x8x128xf32> to vector<8x128xf32>
    %c1_69 = arith.constant 1 : index
    %c0_70 = arith.constant 0 : index
    %c0_71 = arith.constant 0 : index
    %104 = vector.load %arg3[%c1_69, %c0_70, %c0_71] : memref<2x8x128xf32, #tpu.memory_space<vmem>>, vector<1x8x128xf32>
    %105 = vector.shape_cast %104 : vector<1x8x128xf32> to vector<8x128xf32>
    %106 = arith.truncf %95 : vector<8x128xf32> to vector<8x128xbf16>
    %107 = arith.truncf %103 : vector<8x128xf32> to vector<8x128xbf16>
    %c0_72 = arith.constant 0 : index
    %c0_73 = arith.constant 0 : index
    %c0_74 = arith.constant 0 : index
    %108 = vector.load %arg9[%c0_72, %c0_73, %c0_74] : memref<4x128x128xbf16, #tpu.memory_space<vmem>>, vector<1x128x128xbf16>
    %109 = vector.shape_cast %108 : vector<1x128x128xbf16> to vector<128x128xbf16>
    %cst_75 = arith.constant dense<0.000000e+00> : vector<8x128xf32>
    %110 = tpu.matmul %106, %109, %cst_75 {dimension_numbers = #tpu.dot_dimension_numbers<[1], [0], [0], [1], [0, 0, 1, 1], [], []>} : vector<8x128xbf16>, vector<128x128xbf16>, vector<8x128xf32> -> vector<8x128xf32>
    %c0_76 = arith.constant 0 : index
    %c0_77 = arith.constant 0 : index
    %c0_78 = arith.constant 0 : index
    %111 = vector.load %arg10[%c0_76, %c0_77, %c0_78] : memref<4x128x128xbf16, #tpu.memory_space<vmem>>, vector<1x128x128xbf16>
    %112 = vector.shape_cast %111 : vector<1x128x128xbf16> to vector<128x128xbf16>
    %cst_79 = arith.constant dense<0.000000e+00> : vector<8x128xf32>
    %113 = tpu.matmul %107, %112, %cst_79 {dimension_numbers = #tpu.dot_dimension_numbers<[1], [0], [0], [1], [0, 0, 1, 1], [], []>} : vector<8x128xbf16>, vector<128x128xbf16>, vector<8x128xf32> -> vector<8x128xf32>
    %114 = arith.addf %110, %113 : vector<8x128xf32>
    %c0_80 = arith.constant 0 : index
    %c0_81 = arith.constant 0 : index
    %c0_82 = arith.constant 0 : index
    %115 = vector.load %arg11[%c0_80, %c0_81, %c0_82] : memref<4x1x128xf32, #tpu.memory_space<vmem>>, vector<1x1x128xf32>
    %116 = vector.shape_cast %115 : vector<1x1x128xf32> to vector<1x128xf32>
    %117 = vector.broadcast %116 : vector<1x128xf32> to vector<8x128xf32>
    %118 = arith.addf %114, %117 : vector<8x128xf32>
    %c1_83 = arith.constant 1 : index
    %c0_84 = arith.constant 0 : index
    %c0_85 = arith.constant 0 : index
    %119 = vector.load %arg9[%c1_83, %c0_84, %c0_85] : memref<4x128x128xbf16, #tpu.memory_space<vmem>>, vector<1x128x128xbf16>
    %120 = vector.shape_cast %119 : vector<1x128x128xbf16> to vector<128x128xbf16>
    %cst_86 = arith.constant dense<0.000000e+00> : vector<8x128xf32>
    %121 = tpu.matmul %106, %120, %cst_86 {dimension_numbers = #tpu.dot_dimension_numbers<[1], [0], [0], [1], [0, 0, 1, 1], [], []>} : vector<8x128xbf16>, vector<128x128xbf16>, vector<8x128xf32> -> vector<8x128xf32>
    %c1_87 = arith.constant 1 : index
    %c0_88 = arith.constant 0 : index
    %c0_89 = arith.constant 0 : index
    %122 = vector.load %arg10[%c1_87, %c0_88, %c0_89] : memref<4x128x128xbf16, #tpu.memory_space<vmem>>, vector<1x128x128xbf16>
    %123 = vector.shape_cast %122 : vector<1x128x128xbf16> to vector<128x128xbf16>
    %cst_90 = arith.constant dense<0.000000e+00> : vector<8x128xf32>
    %124 = tpu.matmul %107, %123, %cst_90 {dimension_numbers = #tpu.dot_dimension_numbers<[1], [0], [0], [1], [0, 0, 1, 1], [], []>} : vector<8x128xbf16>, vector<128x128xbf16>, vector<8x128xf32> -> vector<8x128xf32>
    %125 = arith.addf %121, %124 : vector<8x128xf32>
    %c1_91 = arith.constant 1 : index
    %c0_92 = arith.constant 0 : index
    %c0_93 = arith.constant 0 : index
    %126 = vector.load %arg11[%c1_91, %c0_92, %c0_93] : memref<4x1x128xf32, #tpu.memory_space<vmem>>, vector<1x1x128xf32>
    %127 = vector.shape_cast %126 : vector<1x1x128xf32> to vector<1x128xf32>
    %128 = vector.broadcast %127 : vector<1x128xf32> to vector<8x128xf32>
    %129 = arith.addf %125, %128 : vector<8x128xf32>
    %c2_94 = arith.constant 2 : index
    %c0_95 = arith.constant 0 : index
    %c0_96 = arith.constant 0 : index
    %130 = vector.load %arg9[%c2_94, %c0_95, %c0_96] : memref<4x128x128xbf16, #tpu.memory_space<vmem>>, vector<1x128x128xbf16>
    %131 = vector.shape_cast %130 : vector<1x128x128xbf16> to vector<128x128xbf16>
    %cst_97 = arith.constant dense<0.000000e+00> : vector<8x128xf32>
    %132 = tpu.matmul %106, %131, %cst_97 {dimension_numbers = #tpu.dot_dimension_numbers<[1], [0], [0], [1], [0, 0, 1, 1], [], []>} : vector<8x128xbf16>, vector<128x128xbf16>, vector<8x128xf32> -> vector<8x128xf32>
    %c2_98 = arith.constant 2 : index
    %c0_99 = arith.constant 0 : index
    %c0_100 = arith.constant 0 : index
    %133 = vector.load %arg10[%c2_98, %c0_99, %c0_100] : memref<4x128x128xbf16, #tpu.memory_space<vmem>>, vector<1x128x128xbf16>
    %134 = vector.shape_cast %133 : vector<1x128x128xbf16> to vector<128x128xbf16>
    %cst_101 = arith.constant dense<0.000000e+00> : vector<8x128xf32>
    %135 = tpu.matmul %107, %134, %cst_101 {dimension_numbers = #tpu.dot_dimension_numbers<[1], [0], [0], [1], [0, 0, 1, 1], [], []>} : vector<8x128xbf16>, vector<128x128xbf16>, vector<8x128xf32> -> vector<8x128xf32>
    %136 = arith.addf %132, %135 : vector<8x128xf32>
    %c2_102 = arith.constant 2 : index
    %c0_103 = arith.constant 0 : index
    %c0_104 = arith.constant 0 : index
    %137 = vector.load %arg11[%c2_102, %c0_103, %c0_104] : memref<4x1x128xf32, #tpu.memory_space<vmem>>, vector<1x1x128xf32>
    %138 = vector.shape_cast %137 : vector<1x1x128xf32> to vector<1x128xf32>
    %139 = vector.broadcast %138 : vector<1x128xf32> to vector<8x128xf32>
    %140 = arith.addf %136, %139 : vector<8x128xf32>
    %c3_105 = arith.constant 3 : index
    %c0_106 = arith.constant 0 : index
    %c0_107 = arith.constant 0 : index
    %141 = vector.load %arg9[%c3_105, %c0_106, %c0_107] : memref<4x128x128xbf16, #tpu.memory_space<vmem>>, vector<1x128x128xbf16>
    %142 = vector.shape_cast %141 : vector<1x128x128xbf16> to vector<128x128xbf16>
    %cst_108 = arith.constant dense<0.000000e+00> : vector<8x128xf32>
    %143 = tpu.matmul %106, %142, %cst_108 {dimension_numbers = #tpu.dot_dimension_numbers<[1], [0], [0], [1], [0, 0, 1, 1], [], []>} : vector<8x128xbf16>, vector<128x128xbf16>, vector<8x128xf32> -> vector<8x128xf32>
    %c3_109 = arith.constant 3 : index
    %c0_110 = arith.constant 0 : index
    %c0_111 = arith.constant 0 : index
    %144 = vector.load %arg10[%c3_109, %c0_110, %c0_111] : memref<4x128x128xbf16, #tpu.memory_space<vmem>>, vector<1x128x128xbf16>
    %145 = vector.shape_cast %144 : vector<1x128x128xbf16> to vector<128x128xbf16>
    %cst_112 = arith.constant dense<0.000000e+00> : vector<8x128xf32>
    %146 = tpu.matmul %107, %145, %cst_112 {dimension_numbers = #tpu.dot_dimension_numbers<[1], [0], [0], [1], [0, 0, 1, 1], [], []>} : vector<8x128xbf16>, vector<128x128xbf16>, vector<8x128xf32> -> vector<8x128xf32>
    %147 = arith.addf %143, %146 : vector<8x128xf32>
    %c3_113 = arith.constant 3 : index
    %c0_114 = arith.constant 0 : index
    %c0_115 = arith.constant 0 : index
    %148 = vector.load %arg11[%c3_113, %c0_114, %c0_115] : memref<4x1x128xf32, #tpu.memory_space<vmem>>, vector<1x1x128xf32>
    %149 = vector.shape_cast %148 : vector<1x1x128xf32> to vector<1x128xf32>
    %150 = vector.broadcast %149 : vector<1x128xf32> to vector<8x128xf32>
    %151 = arith.addf %147, %150 : vector<8x128xf32>
    %152 = arith.negf %118 : vector<8x128xf32>
    %153 = math.exp %152 : vector<8x128xf32>
    %cst_116 = arith.constant 1.000000e+00 : f32
    %154 = vector.broadcast %cst_116 : f32 to vector<8x128xf32>
    %155 = arith.addf %154, %153 : vector<8x128xf32>
    %156 = arith.divf %154, %155 : vector<8x128xf32>
    %157 = arith.negf %129 : vector<8x128xf32>
    %158 = math.exp %157 : vector<8x128xf32>
    %cst_117 = arith.constant 1.000000e+00 : f32
    %159 = vector.broadcast %cst_117 : f32 to vector<8x128xf32>
    %160 = arith.addf %159, %158 : vector<8x128xf32>
    %161 = arith.divf %159, %160 : vector<8x128xf32>
    %162 = math.tanh %140 : vector<8x128xf32>
    %163 = arith.negf %151 : vector<8x128xf32>
    %164 = math.exp %163 : vector<8x128xf32>
    %cst_118 = arith.constant 1.000000e+00 : f32
    %165 = vector.broadcast %cst_118 : f32 to vector<8x128xf32>
    %166 = arith.addf %165, %164 : vector<8x128xf32>
    %167 = arith.divf %165, %166 : vector<8x128xf32>
    %168 = arith.mulf %161, %105 : vector<8x128xf32>
    %169 = arith.mulf %156, %162 : vector<8x128xf32>
    %170 = arith.addf %168, %169 : vector<8x128xf32>
    %171 = math.tanh %170 : vector<8x128xf32>
    %172 = arith.mulf %167, %171 : vector<8x128xf32>
    %c1_119 = arith.constant 1 : index
    %c0_120 = arith.constant 0 : index
    %c0_121 = arith.constant 0 : index
    %173 = vector.load %arg13[%c1_119, %c0_120, %c0_121] : memref<2x8x128xf32, #tpu.memory_space<vmem>>, vector<1x8x128xf32>
    %174 = vector.shape_cast %173 : vector<1x8x128xf32> to vector<8x128xf32>
    %175 = vector.shape_cast %172 : vector<8x128xf32> to vector<1x8x128xf32>
    tpu.vector_store %arg13[%c1_119, %c0_120, %c0_121], %175 {strides = array<i32>} : memref<2x8x128xf32, #tpu.memory_space<vmem>>, vector<1x8x128xf32>,
    %c1_122 = arith.constant 1 : index
    %c0_123 = arith.constant 0 : index
    %c0_124 = arith.constant 0 : index
    %176 = vector.load %arg14[%c1_122, %c0_123, %c0_124] : memref<2x8x128xf32, #tpu.memory_space<vmem>>, vector<1x8x128xf32>
    %177 = vector.shape_cast %176 : vector<1x8x128xf32> to vector<8x128xf32>
    %178 = vector.shape_cast %170 : vector<8x128xf32> to vector<1x8x128xf32>
    tpu.vector_store %arg14[%c1_122, %c0_123, %c0_124], %178 {strides = array<i32>} : memref<2x8x128xf32, #tpu.memory_space<vmem>>, vector<1x8x128xf32>,
    %179 = arith.truncf %172 : vector<8x128xf32> to vector<8x128xbf16>
    %c0_125 = arith.constant 0 : index
    %c0_126 = arith.constant 0 : index
    %180 = vector.load %arg4[%c0_125, %c0_126] : memref<128x256xbf16, #tpu.memory_space<vmem>>, vector<128x256xbf16>
    %cst_127 = arith.constant dense<0.000000e+00> : vector<8x256xf32>
    %181 = tpu.matmul %179, %180, %cst_127 {dimension_numbers = #tpu.dot_dimension_numbers<[1], [0], [0], [1], [0, 0, 1, 1], [], []>} : vector<8x128xbf16>, vector<128x256xbf16>, vector<8x256xf32> -> vector<8x256xf32>
    %c0_128 = arith.constant 0 : index
    %c0_129 = arith.constant 0 : index
    %182 = vector.load %arg5[%c0_128, %c0_129] : memref<1x256xf32, #tpu.memory_space<vmem>>, vector<1x256xf32>
    %183 = vector.broadcast %182 : vector<1x256xf32> to vector<8x256xf32>
    %184 = arith.addf %181, %183 : vector<8x256xf32>
    %cst_130 = arith.constant dense<0xFF800000> : vector<8xf32>
    %185 = vector.multi_reduction <maximumf>, %184, %cst_130 [1] : vector<8x256xf32> to vector<8xf32>
    %186 = vector.shape_cast %185 : vector<8xf32> to vector<8x1xf32>
    %187 = vector.broadcast %186 : vector<8x1xf32> to vector<8x256xf32>
    %188 = arith.subf %184, %187 : vector<8x256xf32>
    %189 = math.exp %188 : vector<8x256xf32>
    %cst_131 = arith.constant dense<0.000000e+00> : vector<8xf32>
    %190 = vector.multi_reduction <add>, %189, %cst_131 [1] : vector<8x256xf32> to vector<8xf32>
    %191 = vector.shape_cast %190 : vector<8xf32> to vector<8x1xf32>
    %192 = math.log %191 : vector<8x1xf32>
    %193 = vector.broadcast %192 : vector<8x1xf32> to vector<8x256xf32>
    %194 = arith.subf %188, %193 : vector<8x256xf32>
    %c0_132 = arith.constant 0 : index
    %c0_133 = arith.constant 0 : index
    %195 = vector.load %arg12[%c0_132, %c0_133] : memref<8x256xf32, #tpu.memory_space<vmem>>, vector<8x256xf32>
    tpu.vector_store %arg12[%c0_132, %c0_133], %194 {strides = array<i32>} : memref<8x256xf32, #tpu.memory_space<vmem>>, vector<8x256xf32>,
    return
  }
}

</mosaic_0001>

<bundles_post_ra>
// kernel: _decoder_forward_impl.1
= control target key start
LH: loop header
LB: loop body
LE: loop exit
PB: predicated region body
PF: predicated region fallthrough
CT: control target
= control target key end

     0   :  { %20 = vsyncpa [#allocation5], 0  ;;  %s3759_s0 = inlined_call_operand.vmem [shape: s32[8], index: 0, kind: input, shape index: {}]   ;;  %s3760_s1 = inlined_call_operand.hbm [shape: f32[256,128], index: 1, kind: input, shape index: {}]   ;;  %s3761_s2 = inlined_call_operand.hbm [shape: f32[2,8,128], index: 2, kind: input, shape index: {}, may-alias: {2,13}]   ;;  %s3762_s3 = inlined_call_operand.hbm [shape: f32[2,8,128], index: 3, kind: input, shape index: {}, may-alias: {3,14}]   ;;  %s3763_s4 = inlined_call_operand.hbm [shape: bf16[128,256], index: 4, kind: input, shape index: {}]   ;;  %s3764_s5 = inlined_call_operand.vmem [shape: f32[1,256], index: 5, kind: input, shape index: {}]   ;;  %s3765_s6 = inlined_call_operand.hbm [shape: bf16[4,128,128], index: 6, kind: input, shape index: {}]   ;;  %s3766_s7 = inlined_call_operand.hbm [shape: bf16[4,128,128], index: 7, kind: input, shape index: {}]   ;;  %s3767_s8 = inlined_call_operand.vmem [shape: f32[4,1,128], index: 8, kind: input, shape index: {}]   ;;  %s3768_s9 = inlined_call_operand.hbm [shape: bf16[4,128,128], index: 9, kind: input, shape index: {}]   ;;  %s3769_s10 = inlined_call_operand.hbm [shape: bf16[4,128,128], index: 10, kind: input, shape index: {}]   ;;  %s3770_s11 = inlined_call_operand.vmem [shape: f32[4,1,128], index: 11, kind: input, shape index: {}]   ;;  %s3771_s12 = inlined_call_operand.hbm [shape: f32[8,256], index: 12, kind: output, shape index: {0}]   ;;  %s3772_s13 = inlined_call_operand.hbm [shape: f32[2,8,128], index: 13, kind: output, shape index: {1}, may-alias: {2,13}]   ;;  %s3773_s14 = inlined_call_operand.hbm [shape: f32[2,8,128], index: 14, kind: output, shape index: {2}, may-alias: {3,14}]  }
   0x1   :  { %21 = vsyncpa [#allocation3], 0 }
   0x2   :  { %22 = vsyncpa [#allocation8], 0 }
   0x3   :  { %23 = vsyncpa [#allocation11], 0 }
   0x4   :  { %24 = vsyncpa [#allocation14], 0 }
   0x5   :  { %25 = vsyncpa [#allocation17], 0 }
   0x6   :  { %26 = vsyncpa [#allocation4], 0 }
   0x7   :  { %27 = vsyncpa [#allocation20], 0  ;;  %s3357_s29 = smov [#allocation7]   ;;  %s3358_s15 = smov [#allocation10]  }
   0x8   :  { %s55_s30 = sshll.u32 %s3357_s29, 4  ;;  %s79_s16 = sshll.u32 %s3358_s15, 4  ;;  %s56_s30 = int_to_ptr.vmem [resolvable:$true] %s55_s30  ;;  %s80_s16 = int_to_ptr.vmem [resolvable:$true] %s79_s16 }
   0x9   :  { %s3117_s17 = scalar_lea.vmem %s56_s30, 256  ;;  %p3122_p1 = scmp.lt.s32.totalorder %s56_s30, %s56_s30 }
   0xa   :  { %p3118_p0 = scmp.ne.s32.totalorder %s56_s30, %s3117_s17  ;;  %p3123_p2 = scmp.lt.s32.totalorder %s3117_s17, %s3117_s17 }
   0xc   :  { %p3124_p3 = por %p3123_p2, %p3122_p1 }
   0xe   :  { %p3125_p4 = pnand %p3124_p3, %p3118_p0 }
  0x10   :  { %3128 = shalt.err (!%p3125_p4)
}
  0x11   :  { %s3359_s18 = smov 128   ;;  %s3360_s19 = smov 8  }
  0x12   :  { %61 = dma.hbm_to_vmem [thread:$0]  %s3761_s2, 256, %s56_s30, [#allocation8], %s3359_s18, %s3359_s18, %s3360_s19  }
  0x13   :  { %s3137_s22 = scalar_lea.vmem %s80_s16, 2048  ;;  %p3142_p6 = scmp.lt.s32.totalorder %s80_s16, %s80_s16 }
  0x14   :  { %p3138_p5 = scmp.ne.s32.totalorder %s80_s16, %s3137_s22  ;;  %p3143_p7 = scmp.lt.s32.totalorder %s3137_s22, %s3137_s22 }
  0x16   :  { %p3144_p8 = por %p3143_p7, %p3142_p6 }
  0x18   :  { %p3145_p9 = pnand %p3144_p8, %p3138_p5 }
  0x1a   :  { %3148 = shalt.err (!%p3145_p9)
}
  0x1b   :  { %85 = dma.hbm_to_vmem [thread:$0]  %s3763_s4, 2048, %s80_s16, [#allocation11], %s3359_s18, %s3359_s18, %s3360_s19  }
  0x1c   :  { %s34_s27 = sshll.u32 %s3759_s0, 4  ;;  %s3361_s28 = smov [#allocation13]   ;;  %s35_s27 = int_to_ptr.vmem [resolvable:$true] %s34_s27 }
  0x1d   :  { %s105_s2 = sshll.u32 %s3361_s28, 4  ;;  %s106_s2 = int_to_ptr.vmem [resolvable:$true] %s105_s2 }
  0x1e   :  { %s3157_s29 = scalar_lea.vmem %s106_s2, 4096  ;;  %p3162_p11 = scmp.lt.s32.totalorder %s106_s2, %s106_s2 }
  0x1f   :  { %p3158_p10 = scmp.ne.s32.totalorder %s106_s2, %s3157_s29  ;;  %p3163_p12 = scmp.lt.s32.totalorder %s3157_s29, %s3157_s29 }
  0x21   :  { %p3164_p13 = por %p3163_p12, %p3162_p11 }
  0x23   :  { %p3165_p0 = pnand %p3164_p13, %p3158_p10 }
  0x25   :  { %3168 = shalt.err (!%p3165_p0)
}
  0x26   :  { %s3362_s30 = smov 64   ;;  %s3363_s15 = smov 4  }
  0x27   :  { %111 = dma.hbm_to_vmem [thread:$0]  %s3766_s7, 4096, %s106_s2, [#allocation14], %s3362_s30, %s3362_s30, %s3363_s15  }
  0x28   :  { %s3169_s0 = scalar_lea.vmem %s35_s27, 16  ;;  %p3174_p2 = scmp.lt.s32.totalorder %s35_s27, %s35_s27 }
  0x29   :  { %p3170_p1 = scmp.ne.s32.totalorder %s35_s27, %s3169_s0  ;;  %p3175_p3 = scmp.lt.s32.totalorder %s3169_s0, %s3169_s0 }
  0x2b   :  { %p3176_p4 = por %p3175_p3, %p3174_p2 }
  0x2d   :  { %p3177_p5 = pnand %p3176_p4, %p3170_p1 }
  0x2f   :  { %3180 = shalt.err (!%p3177_p5)
}
  0x30   :  { %s3364_s17 = smov [#allocation2]   ;;  %s3365_s20 = smov [#allocation6]  }
  0x31   :  { %37 = dma.vmem_to_smem %s35_s27, 16, %s3364_s17, [#allocation5]  }
  0x32   :  { %s43_s21 = sshll.u32 %s3365_s20, 4  ;;  %s3366_s22 = smov [#allocation9]   ;;  %s44_s21 = int_to_ptr.vmem [resolvable:$true] %s43_s21 }
  0x33   :  { %s67_s23 = sshll.u32 %s3366_s22, 4  ;;  %s3189_s24 = scalar_lea.vmem %s44_s21, 4096  ;;  %s68_s23 = int_to_ptr.vmem [resolvable:$true] %s67_s23 }
  0x34   :  { %p3190_p6 = scmp.ne.s32.totalorder %s44_s21, %s3189_s24  ;;  %p3194_p7 = scmp.lt.s32.totalorder %s44_s21, %s44_s21 }
  0x35   :  { %p3195_p8 = scmp.lt.s32.totalorder %s3189_s24, %s3189_s24 }
  0x37   :  { %p3196_p9 = por %p3195_p8, %p3194_p7 }
  0x39   :  { %p3197_p10 = pnand %p3196_p9, %p3190_p6 }
  0x3b   :  { %3200 = shalt.err (!%p3197_p10)
}
  0x3c   :  { %49 = dma.hbm_to_vmem [thread:$0]  %s3760_s1, 4096, %s44_s21, [#allocation3], %s3359_s18, %s3359_s18, %s3360_s19  }
  0x3d   :  { %s3209_s26 = scalar_lea.vmem %s68_s23, 256  ;;  %p3214_p12 = scmp.lt.s32.totalorder %s68_s23, %s68_s23 }
  0x3e   :  { %p3210_p11 = scmp.ne.s32.totalorder %s68_s23, %s3209_s26  ;;  %p3215_p13 = scmp.lt.s32.totalorder %s3209_s26, %s3209_s26 }
  0x40   :  { %p3216_p0 = por %p3215_p13, %p3214_p12 }
  0x42   :  { %p3217_p1 = pnand %p3216_p0, %p3210_p11 }
  0x44   :  { %3220 = shalt.err (!%p3217_p1)
}
  0x45   :  { %73 = dma.hbm_to_vmem [thread:$0]  %s3762_s3, 256, %s68_s23, [#allocation8], %s3359_s18, %s3359_s18, %s3360_s19  }
  0x46   :  { %s3367_s2 = smov [#allocation12]   ;;  %s3368_s4 = smov [#allocation15]  }
  0x47   :  { %s93_s29 = sshll.u32 %s3367_s2, 4  ;;  %s119_s16 = sshll.u32 %s3368_s4, 4  ;;  %s94_s29 = int_to_ptr.vmem [resolvable:$true] %s93_s29  ;;  %s120_s16 = int_to_ptr.vmem [resolvable:$true] %s119_s16 }
  0x48   :  { %s3229_s1 = scalar_lea.vmem %s94_s29, 4096  ;;  %p3234_p3 = scmp.lt.s32.totalorder %s94_s29, %s94_s29 }
  0x49   :  { %p3230_p2 = scmp.ne.s32.totalorder %s94_s29, %s3229_s1  ;;  %p3235_p4 = scmp.lt.s32.totalorder %s3229_s1, %s3229_s1 }
  0x4b   :  { %p3236_p5 = por %p3235_p4, %p3234_p3 }
  0x4d   :  { %p3237_p6 = pnand %p3236_p5, %p3230_p2 }
  0x4f   :  { %3240 = shalt.err (!%p3237_p6)
}
  0x50   :  { %99 = dma.hbm_to_vmem [thread:$0]  %s3765_s6, 4096, %s94_s29, [#allocation11], %s3362_s30, %s3362_s30, %s3363_s15  }
  0x51   :  { %s3249_s3 = scalar_lea.vmem %s120_s16, 4096  ;;  %p3254_p8 = scmp.lt.s32.totalorder %s120_s16, %s120_s16 }
  0x52   :  { %p3250_p7 = scmp.ne.s32.totalorder %s120_s16, %s3249_s3  ;;  %p3255_p9 = scmp.lt.s32.totalorder %s3249_s3, %s3249_s3 }
  0x54   :  { %p3256_p10 = por %p3255_p9, %p3254_p8 }
  0x56   :  { %p3257_p11 = pnand %p3256_p10, %p3250_p7 }
  0x58   :  { %3260 = shalt.err (!%p3257_p11)
}
  0x59   :  { %125 = dma.hbm_to_vmem [thread:$0]  %s3768_s9, 4096, %s120_s16, [#allocation14], %s3362_s30, %s3362_s30, %s3363_s15  }
  0x5a   :  { %s3369_s22 = smov [#allocation16]  }
  0x5b   :  { %s131_s23 = sshll.u32 %s3369_s22, 4  ;;  %s132_s23 = int_to_ptr.vmem [resolvable:$true] %s131_s23 }
  0x5c   :  { %s3269_s24 = scalar_lea.vmem %s132_s23, 4096  ;;  %p3274_p13 = scmp.lt.s32.totalorder %s132_s23, %s132_s23 }
  0x5d   :  { %p3270_p12 = scmp.ne.s32.totalorder %s132_s23, %s3269_s24  ;;  %p3275_p0 = scmp.lt.s32.totalorder %s3269_s24, %s3269_s24 }
  0x5f   :  { %p3276_p1 = por %p3275_p0, %p3274_p13 }
  0x61   :  { %p3277_p2 = pnand %p3276_p1, %p3270_p12 }
  0x63   :  { %3280 = shalt.err (!%p3277_p2)
}
  0x64   :  { %137 = dma.hbm_to_vmem [thread:$0]  %s3769_s10, 4096, %s132_s23, [#allocation17], %s3362_s30, %s3362_s30, %s3363_s15  }
  0x65   :  { %3341 = dma.done.wait [#allocation5], 16  }
  0x66   :  { %3342 = vsyncadd [#allocation5], 4294967280 }
  0x67   :  { %3343 = dma.done.wait [#allocation3], 4096  }
  0x68   :  { %3344 = vsyncadd [#allocation3], 4294963200 }
  0x69   :  { %3345 = dma.done.wait [#allocation8], 512  }
  0x6a   :  { %3346 = vsyncadd [#allocation8], 4294966784 }
  0x6b   :  { %3347 = dma.done.wait [#allocation11], 6144  }
  0x6c   :  { %3348 = vsyncadd [#allocation11], 4294961152 }
  0x6d   :  { %3349 = dma.done.wait [#allocation14], 8192  }
  0x6e   :  { %3350 = vsyncadd [#allocation14], 4294959104 }
  0x6f   :  { %3351 = dma.done.wait [#allocation17], 4096  }
  0x70   :  { %3352 = vsyncadd [#allocation17], 4294963200 }
  0x71   :  { %167 = sfence }
  0x72   :  { %v2919_v0 = vld [vmem:[#allocation13 + $0x38] sm:$0xff]   ;;  %v3370_v1 = vmov 0.0   ;;  %v2921_v3 = vld [vmem:[#allocation13 + $0x30] sm:$0xff]   ;;  %vm3371_vm0 = vmmov 0   ;;  %v2923_v5 = vld [vmem:[#allocation13 + $0x28] sm:$0xff]   ;;  %s169_s9 = sld [smem:[#allocation2]] }
  0x73   :  { %2580 = vmatprep.subr.bf16.mxu0 %v3370_v1  ;;  %2600 = vmatprep.subr.bf16.mxu1 %v3370_v1  ;;  %v2920_v2 = vld [vmem:[#allocation12 + $0x38] sm:$0xff]   ;;  %v2922_v4 = vld [vmem:[#allocation12 + $0x30] sm:$0xff]   ;;  %v2924_v6 = vld [vmem:[#allocation12 + $0x28] sm:$0xff]   ;;  %vm214_vm1 = vcmask 1040384   ;;  %s3516_s10 = sld [smem:[#allocation2 + $0x1]]  ;;  %vm216_vm2 = vcmask 1041408  }
  0x74   :  { %2581 = vmatpush3.bf16.msra.mxu0 %v2919_v0  ;;  %2596 = vmatprep.mubr.msk.bf16.mxu0 %vm3371_vm0, %v3370_v1  ;;  %v2925_v7 = vld [vmem:[#allocation13 + $0x20] sm:$0xff]   ;;  %v2927_v9 = vld [vmem:[#allocation13 + $0x18] sm:$0xff]   ;;  %v2929_v11 = vld [vmem:[#allocation13 + $0x10] sm:$0xff]   ;;  %s2266_s30 = sld [smem:[#allocation2 + $0x2]]  ;;  %vm218_vm3 = vcmask 1042432   ;;  %vm220_vm4 = vcmask 1043456  }
  0x75   :  { %2601 = vmatpush3.bf16.msra.mxu1 %v2920_v2  ;;  %2582 = vmatprep.subr.bf16.mxu0 %v3370_v1  ;;  %v2926_v8 = vld [vmem:[#allocation12 + $0x20] sm:$0xff]   ;;  %v2928_v10 = vld [vmem:[#allocation12 + $0x18] sm:$0xff]   ;;  %v2930_v12 = vld [vmem:[#allocation12 + $0x10] sm:$0xff]   ;;  %s2267_s15 = sld [smem:[#allocation2 + $0x3]]  ;;  %vm222_vm5 = vcmask 1044480   ;;  %vm224_vm6 = vcmask 1045504  }
  0x76   :  { %2602 = vmatprep.subr.bf16.mxu1 %v3370_v1  ;;  %2616 = vmatprep.mubr.msk.bf16.mxu1 %vm3371_vm0, %v3370_v1  ;;  %s3520_s25 = sld [smem:[#allocation2 + $0x4]]  ;;  %v2931_v13 = vld [vmem:[#allocation13 + $0x8] sm:$0xff]   ;;  %vm226_vm7 = vcmask 1046528   ;;  %v2933_v16 = vld [vmem:[#allocation13] sm:$0xff]   ;;  %v2935_v37 = vld [vmem:[#allocation13 + $0x78] sm:$0xff]  }
  0x77   :  { %s3522_s26 = sld [smem:[#allocation2 + $0x5]]  ;;  %v2932_v14 = vld [vmem:[#allocation12 + $0x8] sm:$0xff]   ;;  %v228_v17 = vld [vmem:[#allocation7] sm:$0xff]  ;;  %v2936_v42 = vld [vmem:[#allocation12 + $0x78] sm:$0xff]  }
  0x78   :  { %2583 = vmatpush3.bf16.msra.mxu0 %v2921_v3  ;;  %s3524_s27 = sld [smem:[#allocation2 + $0x6]]  ;;  %s170_s28 = scalar_lea.vmem [#allocation6], %s169_s9  ;;  %v2934_v19 = vld [vmem:[#allocation12] sm:$0xff]   ;;  %v3537_v30 = vpack.c.bf16 %v228_v17, %v228_v17  ;;  %v2937_v44 = vld [vmem:[#allocation13 + $0x70] sm:$0xff]   ;;  %v2939_v46 = vld [vmem:[#allocation13 + $0x68] sm:$0xff]  }
  0x79   :  { %2603 = vmatpush3.bf16.msra.mxu1 %v2922_v4  ;;  %2584 = vmatprep.subr.bf16.mxu0 %v3370_v1  ;;  %v171_v15 = vld [vmem:[%s170_s28] sm:$0x1]  ;;  %s3527_s2 = sld [smem:[#allocation2 + $0x7]]  ;;  %s173_s29 = scalar_lea.vmem [#allocation6], %s3516_s10  ;;  %v2938_v45 = vld [vmem:[#allocation12 + $0x70] sm:$0xff]   ;;  %v2940_v47 = vld [vmem:[#allocation12 + $0x68] sm:$0xff]  }
  0x7a   :  { %2604 = vmatprep.subr.bf16.mxu1 %v3370_v1  ;;  %v174_v18 = vld [vmem:[%s173_s29] sm:$0x1]  ;;  %s176_s4 = scalar_lea.vmem [#allocation6], %s2266_s30  ;;  %v2943_v50 = vld [vmem:[#allocation13 + $0x58] sm:$0xff]   ;;  %v2945_v52 = vld [vmem:[#allocation13 + $0x50] sm:$0xff]  }
  0x7b   :  { %v177_v20 = vld [vmem:[%s176_s4] sm:$0x1]  ;;  %v194_v21 = vrot.slane %v174_v18, 7  ;;  %s179_s16 = scalar_lea.vmem [#allocation6], %s2267_s15  ;;  %v2944_v51 = vld [vmem:[#allocation12 + $0x58] sm:$0xff]   ;;  %v2946_v53 = vld [vmem:[#allocation12 + $0x50] sm:$0xff]  }
  0x7c   :  { %2585 = vmatpush3.bf16.msra.mxu0 %v2923_v5  ;;  %v180_v22 = vld [vmem:[%s179_s16] sm:$0x1]  ;;  %v197_v23 = vrot.slane %v177_v20, 6  ;;  %s182_s1 = scalar_lea.vmem [#allocation6], %s3520_s25  ;;  %v2947_v54 = vld [vmem:[#allocation13 + $0x48] sm:$0xff]   ;;  %v2951_v58 = vld [vmem:[#allocation13 + $0xb8] sm:$0xff]  }
  0x7d   :  { %2605 = vmatpush3.bf16.msra.mxu1 %v2924_v6  ;;  %2586 = vmatprep.subr.bf16.mxu0 %v3370_v1  ;;  %v183_v24 = vld [vmem:[%s182_s1] sm:$0x1]  ;;  %v200_v25 = vrot.slane %v180_v22, 5  ;;  %v215_v26 = vsel %vm214_vm1, %v171_v15, %v194_v21  ;;  %s185_s0 = scalar_lea.vmem [#allocation6], %s3522_s26  ;;  %v2948_v55 = vld [vmem:[#allocation12 + $0x48] sm:$0xff]   ;;  %v2952_v59 = vld [vmem:[#allocation12 + $0xb8] sm:$0xff]  }
  0x7e   :  { %2606 = vmatprep.subr.bf16.mxu1 %v3370_v1  ;;  %v186_v27 = vld [vmem:[%s185_s0] sm:$0x1]  ;;  %v203_v28 = vrot.slane %v183_v24, 4  ;;  %v217_v29 = vsel %vm216_vm2, %v215_v26, %v197_v23  ;;  %s188_s17 = scalar_lea.vmem [#allocation6], %s3524_s27  ;;  %v2953_v60 = vld [vmem:[#allocation13 + $0xb0] sm:$0xff]   ;;  %v2955_v62 = vld [vmem:[#allocation13 + $0xa8] sm:$0xff]  }
  0x7f   :  { %v189_v31 = vld [vmem:[%s188_s17] sm:$0x1]  ;;  %v206_v32 = vrot.slane %v186_v27, 3  ;;  %v219_v33 = vsel %vm218_vm3, %v217_v29, %v200_v25  ;;  %s191_s3 = scalar_lea.vmem [#allocation6], %s3527_s2  ;;  %v2954_v61 = vld [vmem:[#allocation12 + $0xb0] sm:$0xff]   ;;  %v2956_v63 = vld [vmem:[#allocation12 + $0xa8] sm:$0xff]  }
  0x80   :  { %2587 = vmatpush3.bf16.msra.mxu0 %v2925_v7  ;;  %v192_v34 = vld [vmem:[%s191_s3] sm:$0x1]  ;;  %v209_v35 = vrot.slane %v189_v31, 2  ;;  %v221_v36 = vsel %vm220_vm4, %v219_v33, %v203_v28  ;;  %v2959_v3 = vld [vmem:[#allocation13 + $0x98] sm:$0xff]   ;;  %v2961_v5 = vld [vmem:[#allocation13 + $0x90] sm:$0xff]  }
  0x81   :  { %2607 = vmatpush3.bf16.msra.mxu1 %v2926_v8  ;;  %2588 = vmatprep.subr.bf16.mxu0 %v3370_v1  ;;  %v212_v38 = vrot.slane %v192_v34, 1  ;;  %v223_v39 = vsel %vm222_vm5, %v221_v36, %v206_v32  ;;  %v2941_v48 = vld [vmem:[#allocation13 + $0x60] sm:$0xff]   ;;  %v2960_v4 = vld [vmem:[#allocation12 + $0x98] sm:$0xff]   ;;  %v2962_v6 = vld [vmem:[#allocation12 + $0x90] sm:$0xff]  }
  0x82   :  { %2608 = vmatprep.subr.bf16.mxu1 %v3370_v1  ;;  %v225_v40 = vsel %vm224_vm6, %v223_v39, %v209_v35  ;;  %v2942_v49 = vld [vmem:[#allocation12 + $0x60] sm:$0xff]   ;;  %v2963_v7 = vld [vmem:[#allocation13 + $0x88] sm:$0xff]   ;;  %v2976_v20 = vld [vmem:[#allocation12 + $0xd8] sm:$0xff]  }
  0x83   :  { %v227_v41 = vsel %vm226_vm7, %v225_v40, %v212_v38  ;;  %v2949_v56 = vld [vmem:[#allocation13 + $0x40] sm:$0xff]   ;;  %v2964_v8 = vld [vmem:[#allocation12 + $0x88] sm:$0xff]   ;;  %v2977_v21 = vld [vmem:[#allocation13 + $0xd0] sm:$0xff]  }
  0x84   :  { %2589 = vmatpush3.bf16.msra.mxu0 %v2927_v9  ;;  %v3549_v43 = vpack.c.bf16 %v227_v41, %v227_v41  ;;  %v2950_v57 = vld [vmem:[#allocation12 + $0x40] sm:$0xff]   ;;  %v2971_v15 = vld [vmem:[#allocation13 + $0xe8] sm:$0xff]   ;;  %v2978_v22 = vld [vmem:[#allocation12 + $0xd0] sm:$0xff]  }
  0x85   :  { %2609 = vmatpush3.bf16.msra.mxu1 %v2928_v10  ;;  %2590 = vmatprep.subr.bf16.mxu0 %v3370_v1  ;;  %v2957_v0 = vld [vmem:[#allocation13 + $0xa0] sm:$0xff]   ;;  %v2979_v23 = vld [vmem:[#allocation13 + $0xc8] sm:$0xff]   ;;  %v2983_v27 = vld [vmem:[#allocation16 + $0x38] sm:$0xff]  }
  0x86   :  { %2610 = vmatprep.subr.bf16.mxu1 %v3370_v1  ;;  %v2958_v2 = vld [vmem:[#allocation12 + $0xa0] sm:$0xff]   ;;  %v2980_v24 = vld [vmem:[#allocation12 + $0xc8] sm:$0xff]   ;;  %v2984_v28 = vld [vmem:[#allocation16 + $0x30] sm:$0xff]  }
  0x87   :  { %v2965_v9 = vld [vmem:[#allocation13 + $0x80] sm:$0xff]   ;;  %v2985_v29 = vld [vmem:[#allocation15 + $0x38] sm:$0xff]   ;;  %v2987_v31 = vld [vmem:[#allocation15 + $0x30] sm:$0xff]  }
  0x88   :  { %2591 = vmatpush3.bf16.msra.mxu0 %v2929_v11  ;;  %v2966_v10 = vld [vmem:[#allocation12 + $0x80] sm:$0xff]   ;;  %v2967_v11 = vld [vmem:[#allocation13 + $0xf8] sm:$0xff]   ;;  %v2989_v33 = vld [vmem:[#allocation15 + $0x28] sm:$0xff]  }
  0x89   :  { %2611 = vmatpush3.bf16.msra.mxu1 %v2930_v12  ;;  %2592 = vmatprep.subr.bf16.mxu0 %v3370_v1  ;;  %v2968_v12 = vld [vmem:[#allocation12 + $0xf8] sm:$0xff]   ;;  %v2973_v17 = vld [vmem:[#allocation13 + $0xe0] sm:$0xff]   ;;  %v2992_v36 = vld [vmem:[#allocation16 + $0x10] sm:$0xff]  }
  0x8a   :  { %2612 = vmatprep.subr.bf16.mxu1 %v3370_v1  ;;  %v2974_v18 = vld [vmem:[#allocation12 + $0xe0] sm:$0xff]   ;;  %v2990_v34 = vld [vmem:[#allocation16 + $0x18] sm:$0xff]   ;;  %v2994_v38 = vld [vmem:[#allocation16 + $0x8] sm:$0xff]  }
  0x8b   :  { %v2981_v25 = vld [vmem:[#allocation13 + $0xc0] sm:$0xff]   ;;  %v2995_v39 = vld [vmem:[#allocation15 + $0x10] sm:$0xff]   ;;  %v1132_v41 = vld [vmem:[#allocation7 + $0x8] sm:$0xff] }
  0x8c   :  { %2593 = vmatpush3.bf16.msra.mxu0 %v2931_v13  ;;  %v2969_v13 = vld [vmem:[#allocation13 + $0xf0] sm:$0xff]   ;;  %v2982_v26 = vld [vmem:[#allocation12 + $0xc0] sm:$0xff]  }
  0x8d   :  { %2613 = vmatpush3.bf16.msra.mxu1 %v2932_v14  ;;  %2594 = vmatprep.subr.bf16.mxu0 %v3370_v1  ;;  %v2970_v14 = vld [vmem:[#allocation12 + $0xf0] sm:$0xff]   ;;  %v2988_v32 = vld [vmem:[#allocation16 + $0x20] sm:$0xff]  }
  0x8e   :  { %2614 = vmatprep.subr.bf16.mxu1 %v3370_v1  ;;  %v2991_v35 = vld [vmem:[#allocation15 + $0x20] sm:$0xff]  }
  0x8f   :  { %v2996_v40 = vld [vmem:[#allocation16] sm:$0xff]  }
  0x90   :  { %2595 = vmatpush3.bf16.msra.mxu0 %v2933_v16  ;;  %v2972_v16 = vld [vmem:[#allocation12 + $0xe8] sm:$0xff]  }
  0x91   :  { %2615 = vmatpush3.bf16.msra.mxu1 %v2934_v19  ;;  %2620 = vmatprep.subr.bf16.mxu0 %v3370_v1  ;;  %v2975_v19 = vld [vmem:[#allocation13 + $0xd8] sm:$0xff]  }
  0x92   :  { %2640 = vmatprep.subr.bf16.mxu1 %v3370_v1 }
  0x93   :  { %2597 = vmatmul.mubr.bf16.vlgmr.msra.gmra.mxu0 %v3537_v30 }
  0x94   :  { %2621 = vmatpush3.bf16.msra.mxu0 %v2935_v37  ;;  %2636 = vmatprep.mubr.msk.bf16.mxu0 %vm3371_vm0, %v3370_v1  ;;  %v2993_v37 = vld [vmem:[#allocation15 + $0x18] sm:$0xff]  }
  0x95   :  { %2622 = vmatprep.subr.bf16.mxu0 %v3370_v1  ;;  %2617 = vmatmul.mubr.bf16.vlgmr.msra.gmra.mxu1 %v3549_v43 }
  0x96   :  { %2641 = vmatpush3.bf16.msra.mxu1 %v2936_v42  ;;  %2656 = vmatprep.mubr.msk.bf16.mxu1 %vm3371_vm0, %v3370_v1 }
  0x97   :  { %2642 = vmatprep.subr.bf16.mxu1 %v3370_v1 }
  0x98   :  { %2623 = vmatpush3.bf16.msra.mxu0 %v2937_v44  ;;  %v3635_v44 = vpack.c.bf16 %v1132_v41, %v1132_v41 }
  0x99   :  { %2624 = vmatprep.subr.bf16.mxu0 %v3370_v1 }
  0x9a   :  { %2643 = vmatpush3.bf16.msra.mxu1 %v2938_v45 }
  0x9b   :  { %2644 = vmatprep.subr.bf16.mxu1 %v3370_v1 }
  0x9c   :  { %2625 = vmatpush3.bf16.msra.mxu0 %v2939_v46  ;;  %v2998_v46 = vld [vmem:[#allocation16 + $0x78] sm:$0xff]  }
  0x9d   :  { %2626 = vmatprep.subr.bf16.mxu0 %v3370_v1 }
  0x9e   :  { %2645 = vmatpush3.bf16.msra.mxu1 %v2940_v47 }
  0x9f   :  { %2646 = vmatprep.subr.bf16.mxu1 %v3370_v1 }
  0xa0   :  { %2627 = vmatpush3.bf16.msra.mxu0 %v2941_v48 }
  0xa1   :  { %2628 = vmatprep.subr.bf16.mxu0 %v3370_v1 }
  0xa2   :  { %2647 = vmatpush3.bf16.msra.mxu1 %v2942_v49  ;;  %v2999_v49 = vld [vmem:[#allocation15] sm:$0xff]  }
  0xa3   :  { %2648 = vmatprep.subr.bf16.mxu1 %v3370_v1 }
  0xa4   :  { %2629 = vmatpush3.bf16.msra.mxu0 %v2943_v50 }
  0xa5   :  { %2630 = vmatprep.subr.bf16.mxu0 %v3370_v1 }
  0xa6   :  { %2649 = vmatpush3.bf16.msra.mxu1 %v2944_v51 }
  0xa7   :  { %2650 = vmatprep.subr.bf16.mxu1 %v3370_v1 }
  0xa8   :  { %2631 = vmatpush3.bf16.msra.mxu0 %v2945_v52  ;;  %v3000_v52 = vld [vmem:[#allocation16 + $0x70] sm:$0xff]  }
  0xa9   :  { %2632 = vmatprep.subr.bf16.mxu0 %v3370_v1 }
  0xaa   :  { %2651 = vmatpush3.bf16.msra.mxu1 %v2946_v53 }
  0xab   :  { %2652 = vmatprep.subr.bf16.mxu1 %v3370_v1 }
  0xac   :  { %2633 = vmatpush3.bf16.msra.mxu0 %v2947_v54 }
  0xad   :  { %2634 = vmatprep.subr.bf16.mxu0 %v3370_v1 }
  0xae   :  { %2653 = vmatpush3.bf16.msra.mxu1 %v2948_v55  ;;  %v3002_v55 = vld [vmem:[#allocation16 + $0x68] sm:$0xff]  }
  0xaf   :  { %2654 = vmatprep.subr.bf16.mxu1 %v3370_v1 }
  0xb0   :  { %2635 = vmatpush3.bf16.msra.mxu0 %v2949_v56  ;;  %v3004_v56 = vld [vmem:[#allocation16 + $0x60] sm:$0xff]  }
  0xb1   :  { %2660 = vmatprep.subr.bf16.mxu0 %v3370_v1 }
  0xb2   :  { %2655 = vmatpush3.bf16.msra.mxu1 %v2950_v57  ;;  %v3006_v57 = vld [vmem:[#allocation16 + $0x58] sm:$0xff]  }
  0xb3   :  { %2637 = vmatmul.mubr.bf16.vlgmr.msra.gmra.mxu0 %v3537_v30  ;;  %2680 = vmatprep.subr.bf16.mxu1 %v3370_v1 }
  0xb4   :  { %2661 = vmatpush3.bf16.msra.mxu0 %v2951_v58  ;;  %2676 = vmatprep.mubr.msk.bf16.mxu0 %vm3371_vm0, %v3370_v1  ;;  %v3008_v58 = vld [vmem:[#allocation16 + $0x50] sm:$0xff]  }
  0xb5   :  { %2662 = vmatprep.subr.bf16.mxu0 %v3370_v1  ;;  %2657 = vmatmul.mubr.bf16.vlgmr.msra.gmra.mxu1 %v3549_v43 }
  0xb6   :  { %2681 = vmatpush3.bf16.msra.mxu1 %v2952_v59  ;;  %2696 = vmatprep.mubr.msk.bf16.mxu1 %vm3371_vm0, %v3370_v1  ;;  %v3010_v59 = vld [vmem:[#allocation16 + $0x48] sm:$0xff]  }
  0xb7   :  { %2682 = vmatprep.subr.bf16.mxu1 %v3370_v1 }
  0xb8   :  { %2663 = vmatpush3.bf16.msra.mxu0 %v2953_v60 }
  0xb9   :  { %2664 = vmatprep.subr.bf16.mxu0 %v3370_v1 }
  0xba   :  { %2683 = vmatpush3.bf16.msra.mxu1 %v2954_v61  ;;  %v3012_v61 = vld [vmem:[#allocation16 + $0x40] sm:$0xff]  }
  0xbb   :  { %2684 = vmatprep.subr.bf16.mxu1 %v3370_v1 }
  0xbc   :  { %2665 = vmatpush3.bf16.msra.mxu0 %v2955_v62 }
  0xbd   :  { %2666 = vmatprep.subr.bf16.mxu0 %v3370_v1 }
  0xbe   :  { %2685 = vmatpush3.bf16.msra.mxu1 %v2956_v63 }
  0xbf   :  { %2686 = vmatprep.subr.bf16.mxu1 %v3370_v1 }
  0xc0   :  { %2667 = vmatpush3.bf16.msra.mxu0 %v2957_v0 }
  0xc1   :  { %2668 = vmatprep.subr.bf16.mxu0 %v3370_v1 }
  0xc2   :  { %2687 = vmatpush3.bf16.msra.mxu1 %v2958_v2 }
  0xc3   :  { %2688 = vmatprep.subr.bf16.mxu1 %v3370_v1 }
  0xc4   :  { %2669 = vmatpush3.bf16.msra.mxu0 %v2959_v3  ;;  %v3014_v3 = vld [vmem:[#allocation16 + $0xb8] sm:$0xff]  }
  0xc5   :  { %2670 = vmatprep.subr.bf16.mxu0 %v3370_v1 }
  0xc6   :  { %2689 = vmatpush3.bf16.msra.mxu1 %v2960_v4 }
  0xc7   :  { %2690 = vmatprep.subr.bf16.mxu1 %v3370_v1 }
  0xc8   :  { %2671 = vmatpush3.bf16.msra.mxu0 %v2961_v5 }
  0xc9   :  { %2672 = vmatprep.subr.bf16.mxu0 %v3370_v1 }
  0xca   :  { %2691 = vmatpush3.bf16.msra.mxu1 %v2962_v6 }
  0xcb   :  { %2692 = vmatprep.subr.bf16.mxu1 %v3370_v1 }
  0xcc   :  { %2673 = vmatpush3.bf16.msra.mxu0 %v2963_v7  ;;  %v2306_v7 = vld [vmem:[%s3767_s8 + $0x1] ss:$0 sm:$0xff] }
  0xcd   :  { %2674 = vmatprep.subr.bf16.mxu0 %v3370_v1 }
  0xce   :  { %2693 = vmatpush3.bf16.msra.mxu1 %v2964_v8 }
  0xcf   :  { %2694 = vmatprep.subr.bf16.mxu1 %v3370_v1 }
  0xd0   :  { %2675 = vmatpush3.bf16.msra.mxu0 %v2965_v9  ;;  %v2288_v9 = vld [vmem:[%s3767_s8] ss:$0 sm:$0xff] }
  0xd1   :  { %2700 = vmatprep.subr.bf16.mxu0 %v3370_v1 }
  0xd2   :  { %2695 = vmatpush3.bf16.msra.mxu1 %v2966_v10 }
  0xd3   :  { %2677 = vmatmul.mubr.bf16.vlgmr.msra.gmra.mxu0 %v3537_v30  ;;  %2720 = vmatprep.subr.bf16.mxu1 %v3370_v1 }
  0xd4   :  { %2701 = vmatpush3.bf16.msra.mxu0 %v2967_v11  ;;  %2716 = vmatprep.mubr.msk.bf16.mxu0 %vm3371_vm0, %v3370_v1  ;;  %v3016_v11 = vld [vmem:[#allocation16 + $0xb0] sm:$0xff]  }
  0xd5   :  { %2702 = vmatprep.subr.bf16.mxu0 %v3370_v1  ;;  %2697 = vmatmul.mubr.bf16.vlgmr.msra.gmra.mxu1 %v3549_v43 }
  0xd6   :  { %2721 = vmatpush3.bf16.msra.mxu1 %v2968_v12  ;;  %2736 = vmatprep.mubr.msk.bf16.mxu1 %vm3371_vm0, %v3370_v1 }
  0xd7   :  { %2722 = vmatprep.subr.bf16.mxu1 %v3370_v1 }
  0xd8   :  { %2703 = vmatpush3.bf16.msra.mxu0 %v2969_v13 }
  0xd9   :  { %2704 = vmatprep.subr.bf16.mxu0 %v3370_v1 }
  0xda   :  { %2723 = vmatpush3.bf16.msra.mxu1 %v2970_v14  ;;  %v3018_v14 = vld [vmem:[#allocation16 + $0xa8] sm:$0xff]  }
  0xdb   :  { %2724 = vmatprep.subr.bf16.mxu1 %v3370_v1 }
  0xdc   :  { %2705 = vmatpush3.bf16.msra.mxu0 %v2971_v15 }
  0xdd   :  { %2706 = vmatprep.subr.bf16.mxu0 %v3370_v1 }
  0xde   :  { %2725 = vmatpush3.bf16.msra.mxu1 %v2972_v16 }
  0xdf   :  { %2726 = vmatprep.subr.bf16.mxu1 %v3370_v1 }
  0xe0   :  { %2707 = vmatpush3.bf16.msra.mxu0 %v2973_v17  ;;  %v3020_v17 = vld [vmem:[#allocation16 + $0xa0] sm:$0xff]  }
  0xe1   :  { %2708 = vmatprep.subr.bf16.mxu0 %v3370_v1 }
  0xe2   :  { %2727 = vmatpush3.bf16.msra.mxu1 %v2974_v18  ;;  %v3022_v18 = vld [vmem:[#allocation16 + $0x98] sm:$0xff]  }
  0xe3   :  { %2728 = vmatprep.subr.bf16.mxu1 %v3370_v1 }
  0xe4   :  { %2709 = vmatpush3.bf16.msra.mxu0 %v2975_v19  ;;  %v3024_v19 = vld [vmem:[#allocation16 + $0x90] sm:$0xff]  }
  0xe5   :  { %2710 = vmatprep.subr.bf16.mxu0 %v3370_v1 }
  0xe6   :  { %2729 = vmatpush3.bf16.msra.mxu1 %v2976_v20  ;;  %v3026_v20 = vld [vmem:[#allocation16 + $0x88] sm:$0xff]  }
  0xe7   :  { %2730 = vmatprep.subr.bf16.mxu1 %v3370_v1 }
  0xe8   :  { %2711 = vmatpush3.bf16.msra.mxu0 %v2977_v21 }
  0xe9   :  { %2712 = vmatprep.subr.bf16.mxu0 %v3370_v1 }
  0xea   :  { %2731 = vmatpush3.bf16.msra.mxu1 %v2978_v22 }
  0xeb   :  { %2732 = vmatprep.subr.bf16.mxu1 %v3370_v1 }
  0xec   :  { %2713 = vmatpush3.bf16.msra.mxu0 %v2979_v23 }
  0xed   :  { %2714 = vmatprep.subr.bf16.mxu0 %v3370_v1 }
  0xee   :  { %2733 = vmatpush3.bf16.msra.mxu1 %v2980_v24  ;;  %v3028_v24 = vld [vmem:[#allocation16 + $0x80] sm:$0xff]  }
  0xef   :  { %2734 = vmatprep.subr.bf16.mxu1 %v3370_v1 }
  0xf0   :  { %2715 = vmatpush3.bf16.msra.mxu0 %v2981_v25 }
  0xf1   :  { %2740 = vmatprep.subr.bf16.mxu0 %v3370_v1 }
  0xf2   :  { %2735 = vmatpush3.bf16.msra.mxu1 %v2982_v26 }
  0xf3   :  { %2717 = vmatmul.mubr.bf16.vlgmr.msra.gmra.mxu0 %v3537_v30  ;;  %2760 = vmatprep.subr.bf16.mxu1 %v3370_v1  ;;  %v2986_v30 = vld [vmem:[#allocation16 + $0x28] sm:$0xff]  }
  0xf4   :  { %2756 = vmatprep.mubr.msk.bf16.mxu0 %vm3371_vm0, %v3370_v1  ;;  %2741 = vmatpush3.bf16.msra.mxu0 %v2983_v27 }
  0xf5   :  { %2737 = vmatmul.mubr.bf16.vlgmr.msra.gmra.mxu1 %v3549_v43  ;;  %2742 = vmatprep.subr.bf16.mxu0 %v3370_v1  ;;  %v2997_v43 = vld [vmem:[#allocation15 + $0x8] sm:$0xff]  }
  0xf6   :  { %2776 = vmatprep.mubr.msk.bf16.mxu1 %vm3371_vm0, %v3370_v1  ;;  %2761 = vmatpush3.bf16.msra.mxu1 %v2985_v29  ;;  %v2324_v29 = vld [vmem:[%s3767_s8 + $0x2] ss:$0 sm:$0xff] }
  0xf7   :  { %2762 = vmatprep.subr.bf16.mxu1 %v3370_v1 }
  0xf8   :  { %2743 = vmatpush3.bf16.msra.mxu0 %v2984_v28 }
  0xf9   :  { %2744 = vmatprep.subr.bf16.mxu0 %v3370_v1 }
  0xfa   :  { %2763 = vmatpush3.bf16.msra.mxu1 %v2987_v31 }
  0xfb   :  { %2764 = vmatprep.subr.bf16.mxu1 %v3370_v1 }
  0xfc   :  { %2745 = vmatpush3.bf16.msra.mxu0 %v2986_v30 }
  0xfd   :  { %2746 = vmatprep.subr.bf16.mxu0 %v3370_v1 }
  0xfe   :  { %2765 = vmatpush3.bf16.msra.mxu1 %v2989_v33  ;;  %v3030_v33 = vld [vmem:[#allocation16 + $0xf8] sm:$0xff]  }
  0xff   :  { %2766 = vmatprep.subr.bf16.mxu1 %v3370_v1 }
 0x100   :  { %2747 = vmatpush3.bf16.msra.mxu0 %v2988_v32 }
 0x101   :  { %2748 = vmatprep.subr.bf16.mxu0 %v3370_v1 }
 0x102   :  { %2767 = vmatpush3.bf16.msra.mxu1 %v2991_v35 }
 0x103   :  { %2768 = vmatprep.subr.bf16.mxu1 %v3370_v1 }
 0x104   :  { %2749 = vmatpush3.bf16.msra.mxu0 %v2990_v34 }
 0x105   :  { %2750 = vmatprep.subr.bf16.mxu0 %v3370_v1 }
 0x106   :  { %2769 = vmatpush3.bf16.msra.mxu1 %v2993_v37 }
 0x107   :  { %2770 = vmatprep.subr.bf16.mxu1 %v3370_v1 }
 0x108   :  { %2751 = vmatpush3.bf16.msra.mxu0 %v2992_v36 }
 0x109   :  { %2752 = vmatprep.subr.bf16.mxu0 %v3370_v1 }
 0x10a   :  { %2771 = vmatpush3.bf16.msra.mxu1 %v2995_v39  ;;  %v3034_v39 = vld [vmem:[#allocation16 + $0xe8] sm:$0xff]  }
 0x10b   :  { %2772 = vmatprep.subr.bf16.mxu1 %v3370_v1 }
 0x10c   :  { %2753 = vmatpush3.bf16.msra.mxu0 %v2994_v38  ;;  %v3032_v38 = vld [vmem:[#allocation16 + $0xf0] sm:$0xff]  }
 0x10d   :  { %2754 = vmatprep.subr.bf16.mxu0 %v3370_v1 }
 0x10e   :  { %2773 = vmatpush3.bf16.msra.mxu1 %v2997_v43 }
 0x10f   :  { %2774 = vmatprep.subr.bf16.mxu1 %v3370_v1 }
 0x110   :  { %2755 = vmatpush3.bf16.msra.mxu0 %v2996_v40  ;;  %v3036_v40 = vld [vmem:[#allocation16 + $0xe0] sm:$0xff]  }
 0x111   :  { %2780 = vmatprep.subr.bf16.mxu0 %v3370_v1 }
 0x112   :  { %2775 = vmatpush3.bf16.msra.mxu1 %v2999_v49 }
 0x113   :  { %2757 = vmatmul.mubr.bf16.vlgmr.msra.gmra.mxu0 %v3635_v44  ;;  %2800 = vmatprep.subr.bf16.mxu1 %v3370_v1 }
 0x114   :  { %2781 = vmatpush3.bf16.msra.mxu0 %v2998_v46  ;;  %2796 = vmatprep.mubr.msk.bf16.mxu0 %vm3371_vm0, %v3370_v1  ;;  %v3038_v46 = vld [vmem:[#allocation16 + $0xd8] sm:$0xff]  }
 0x115   :  { %2782 = vmatprep.subr.bf16.mxu0 %v3370_v1 }
 0x118   :  { %2783 = vmatpush3.bf16.msra.mxu0 %v3000_v52 }
 0x119   :  { %2784 = vmatprep.subr.bf16.mxu0 %v3370_v1 }
 0x11c   :  { %2785 = vmatpush3.bf16.msra.mxu0 %v3002_v55 }
 0x11d   :  { %2786 = vmatprep.subr.bf16.mxu0 %v3370_v1 }
 0x120   :  { %2787 = vmatpush3.bf16.msra.mxu0 %v3004_v56  ;;  %v2342_v56 = vld [vmem:[%s3767_s8 + $0x3] ss:$0 sm:$0xff] }
 0x121   :  { %2788 = vmatprep.subr.bf16.mxu0 %v3370_v1 }
 0x124   :  { %2789 = vmatpush3.bf16.msra.mxu0 %v3006_v57 }
 0x125   :  { %2790 = vmatprep.subr.bf16.mxu0 %v3370_v1 }
 0x128   :  { %2791 = vmatpush3.bf16.msra.mxu0 %v3008_v58 }
 0x129   :  { %2792 = vmatprep.subr.bf16.mxu0 %v3370_v1 }
 0x12c   :  { %2793 = vmatpush3.bf16.msra.mxu0 %v3010_v59 }
 0x12d   :  { %2794 = vmatprep.subr.bf16.mxu0 %v3370_v1 }
 0x130   :  { %2795 = vmatpush3.bf16.msra.mxu0 %v3012_v61 }
 0x131   :  { %2820 = vmatprep.subr.bf16.mxu0 %v3370_v1 }
 0x133   :  { %2797 = vmatmul.mubr.bf16.vlgmr.msra.gmra.mxu0 %v3635_v44 }
 0x134   :  { %2821 = vmatpush3.bf16.msra.mxu0 %v3014_v3  ;;  %2836 = vmatprep.mubr.msk.bf16.mxu0 %vm3371_vm0, %v3370_v1 }
 0x135   :  { %2822 = vmatprep.subr.bf16.mxu0 %v3370_v1 }
 0x138   :  { %2823 = vmatpush3.bf16.msra.mxu0 %v3016_v11  ;;  %v3009_v11 = vld [vmem:[#allocation15 + $0x58] sm:$0xff]  }
 0x139   :  { %2824 = vmatprep.subr.bf16.mxu0 %v3370_v1 }
 0x13c   :  { %2825 = vmatpush3.bf16.msra.mxu0 %v3018_v14  ;;  %v3015_v14 = vld [vmem:[#allocation15 + $0x40] sm:$0xff]  }
 0x13d   :  { %2826 = vmatprep.subr.bf16.mxu0 %v3370_v1 }
 0x140   :  { %2827 = vmatpush3.bf16.msra.mxu0 %v3020_v17  ;;  %v3021_v17 = vld [vmem:[#allocation15 + $0xa8] sm:$0xff]  }
 0x141   :  { %2828 = vmatprep.subr.bf16.mxu0 %v3370_v1 }
 0x144   :  { %2829 = vmatpush3.bf16.msra.mxu0 %v3022_v18  ;;  %v3023_v18 = vld [vmem:[#allocation15 + $0xa0] sm:$0xff]  }
 0x145   :  { %2830 = vmatprep.subr.bf16.mxu0 %v3370_v1 }
 0x148   :  { %2831 = vmatpush3.bf16.msra.mxu0 %v3024_v19  ;;  %v3025_v19 = vld [vmem:[#allocation15 + $0x98] sm:$0xff]  }
 0x149   :  { %2832 = vmatprep.subr.bf16.mxu0 %v3370_v1 }
 0x14c   :  { %2833 = vmatpush3.bf16.msra.mxu0 %v3026_v20  ;;  %v3027_v20 = vld [vmem:[#allocation15 + $0x90] sm:$0xff]  }
 0x14d   :  { %2834 = vmatprep.subr.bf16.mxu0 %v3370_v1 }
 0x150   :  { %2835 = vmatpush3.bf16.msra.mxu0 %v3028_v24 }
 0x151   :  { %2860 = vmatprep.subr.bf16.mxu0 %v3370_v1 }
 0x153   :  { %v346_v42 = vpop.f32.mrf.mxu0  ;;  %2837 = vmatmul.mubr.bf16.vlgmr.msra.gmra.mxu0 %v3635_v44 }
 0x154   :  { %2861 = vmatpush3.bf16.msra.mxu0 %v3030_v33  ;;  %2876 = vmatprep.mubr.msk.bf16.mxu0 %vm3371_vm0, %v3370_v1  ;;  %v3045_v33 = vld [vmem:[#allocation15 + $0xc8] sm:$0xff]  }
 0x155   :  { %v2598_v45 = vpop.f32.mrf.mxu0  ;;  %v434_v47 = vpop.f32.mrf.mxu1  ;;  %2862 = vmatprep.subr.bf16.mxu0 %v3370_v1 }
 0x156   :  { %v435_v6 = vadd.f32 %v434_v47, %v346_v42  ;;  %v229_v42 = vld [vmem:[#allocation9] sm:$0xff] }
 0x157   :  { %v349_v48 = vpop.f32.mrf.mxu0  ;;  %v2618_v50 = vpop.f32.mrf.mxu1 }
 0x158   :  { %v447_v13 = vadd.f32 %v2288_v9, %v435_v6  ;;  %2863 = vmatpush3.bf16.msra.mxu0 %v3032_v38  ;;  %v3040_v50 = vld [vmem:[#allocation16 + $0xd0] sm:$0xff]  }
 0x159   :  { %v2599_v51 = vpop.f32.mrf.mxu0  ;;  %v437_v53 = vpop.f32.mrf.mxu1  ;;  %2864 = vmatprep.subr.bf16.mxu0 %v3370_v1  ;;  %v3003_v9 = vld [vmem:[#allocation15 + $0x70] sm:$0xff]  }
 0x15a   :  { %v2343_v16 = vmul.f32 -1.442695, %v447_v13  ;;  %v3042_v51 = vld [vmem:[#allocation16 + $0xc8] sm:$0xff]   ;;  %v3044_v53 = vld [vmem:[#allocation16 + $0xc0] sm:$0xff]  }
 0x15b   :  { %v2619_v54 = vpop.f32.mrf.mxu1  ;;  %v3013_v13 = vld [vmem:[#allocation15 + $0x48] sm:$0xff]  }
 0x15c   :  { %2865 = vmatpush3.bf16.msra.mxu0 %v3034_v39 }
 0x15d   :  { %2866 = vmatprep.subr.bf16.mxu0 %v3370_v1 }
 0x160   :  { %2867 = vmatpush3.bf16.msra.mxu0 %v3036_v40 }
 0x161   :  { %2868 = vmatprep.subr.bf16.mxu0 %v3370_v1 }
 0x164   :  { %2869 = vmatpush3.bf16.msra.mxu0 %v3038_v46 }
 0x165   :  { %2870 = vmatprep.subr.bf16.mxu0 %v3370_v1 }
 0x168   :  { %2871 = vmatpush3.bf16.msra.mxu0 %v3040_v50  ;;  %v3050_v50 = vld [vmem:[#allocation10 + $0x60] ss:$8 sps:$4 sm:$0xff]  }
 0x169   :  { %2872 = vmatprep.subr.bf16.mxu0 %v3370_v1 }
 0x16c   :  { %2873 = vmatpush3.bf16.msra.mxu0 %v3042_v51  ;;  %v3055_v51 = vld [vmem:[#allocation10 + $0x54] ss:$8 sps:$4 sm:$0xff]  }
 0x16d   :  { %2874 = vmatprep.subr.bf16.mxu0 %v3370_v1 }
 0x170   :  { %2875 = vmatpush3.bf16.msra.mxu0 %v3044_v53  ;;  %v3058_v53 = vld [vmem:[#allocation10 + $0x44] ss:$8 sps:$4 sm:$0xff]  }
 0x173   :  { %v564_v60 = vpop.f32.mrf.mxu0  ;;  %2877 = vmatmul.mubr.bf16.vlgmr.msra.gmra.mxu0 %v3635_v44  ;;  %v3005_v44 = vld [vmem:[#allocation15 + $0x68] sm:$0xff]  }
 0x175   :  { %v2638_v62 = vpop.f32.mrf.mxu0  ;;  %v652_v63 = vpop.f32.mrf.mxu1 }
 0x176   :  { %v653_v4 = vadd.f32 %v652_v63, %v564_v60 }
 0x177   :  { %v567_v0 = vpop.f32.mrf.mxu0  ;;  %v2658_v2 = vpop.f32.mrf.mxu1 }
 0x178   :  { %v666_v12 = vadd.f32 %v2306_v7, %v653_v4  ;;  %v3001_v7 = vld [vmem:[#allocation15 + $0x78] sm:$0xff]  }
 0x179   :  { %v2639_v5 = vpop.f32.mrf.mxu0  ;;  %v655_v8 = vpop.f32.mrf.mxu1 }
 0x17a   :  { %v2344_v15 = vmul.f32 -1.442695, %v666_v12  ;;  %v3011_v12 = vld [vmem:[#allocation15 + $0x50] sm:$0xff]  }
 0x17b   :  { %v2659_v10 = vpop.f32.mrf.mxu1 }
 0x17c   :  { %3071 = vpow2.f32 %v2344_v15  ;;  %v3007_v10 = vld [vmem:[#allocation15 + $0x60] sm:$0xff]   ;;  %v3017_v15 = vld [vmem:[#allocation15 + $0xb8] sm:$0xff]  }
 0x17d   :  { %3073 = vpow2.f32 %v2343_v16  ;;  %v3019_v16 = vld [vmem:[#allocation15 + $0xb0] sm:$0xff]  }
 0x189   :  { %v3072_v21 = vpop.eup %3071 }
 0x18a   :  { %v3074_v22 = vpop.eup %3073  ;;  %v1114_v25 = vadd.f32 1.0, %v3072_v21  ;;  %v3029_v21 = vld [vmem:[#allocation15 + $0x88] sm:$0xff]  }
 0x18b   :  { %v1108_v27 = vadd.f32 1.0, %v3074_v22  ;;  %v3031_v22 = vld [vmem:[#allocation15 + $0x80] sm:$0xff]  }
 0x18c   :  { %3075 = vrcp.f32 %v1114_v25  ;;  %v3033_v25 = vld [vmem:[#allocation15 + $0xf8] sm:$0xff]  }
 0x18d   :  { %3077 = vrcp.f32 %v1108_v27 }
 0x193   :  { %v783_v23 = vpop.f32.mrf.mxu0 }
 0x195   :  { %v2678_v26 = vpop.f32.mrf.mxu0  ;;  %v871_v28 = vpop.f32.mrf.mxu1 }
 0x196   :  { %v872_v30 = vadd.f32 %v871_v28, %v783_v23  ;;  %v3035_v28 = vld [vmem:[#allocation15 + $0xf0] sm:$0xff]  }
 0x197   :  { %v786_v31 = vpop.f32.mrf.mxu0  ;;  %v2698_v32 = vpop.f32.mrf.mxu1 }
 0x198   :  { %v885_v34 = vadd.f32 %v2324_v29, %v872_v30  ;;  %v3037_v29 = vld [vmem:[#allocation15 + $0xe8] sm:$0xff]   ;;  %v3039_v30 = vld [vmem:[#allocation15 + $0xe0] sm:$0xff]   ;;  %v3041_v31 = vld [vmem:[#allocation15 + $0xd8] sm:$0xff]  }
 0x199   :  { %v2679_v35 = vpop.f32.mrf.mxu0  ;;  %v874_v36 = vpop.f32.mrf.mxu1  ;;  %v3043_v32 = vld [vmem:[#allocation15 + $0xd0] sm:$0xff]  }
 0x19a   :  { %3079 = vtanh.f32 %v885_v34  ;;  %v3076_v41 = vpop.eup %3075  ;;  %v3046_v34 = vld [vmem:[#allocation15 + $0xc0] sm:$0xff]  }
 0x19b   :  { %v2699_v37 = vpop.f32.mrf.mxu1  ;;  %v3078_v43 = vpop.eup %3077  ;;  %v1124_v47 = vmul.f32 %v3076_v41, %v229_v42 }
 0x1a7   :  { %v3080_v45 = vpop.eup %3079 }
 0x1a8   :  { %v1125_v48 = vmul.f32 %v3080_v45, %v3078_v43 }
 0x1aa   :  { %v1126_v49 = vadd.f32 %v1125_v48, %v1124_v47  ;;  %v3049_v48 = vld [vmem:[#allocation10 + $0x74] ss:$8 sps:$4 sm:$0xff]  }
 0x1ab   :  { %2147 = vmatprep.subr.bf16.mxu0 %v3049_v48 }
 0x1ac   :  { %1130 = vst [vmem:[#allocation21] sm:$0xff] %v1126_v49 }
 0x1b3   :  { %v1002_v52 = vpop.f32.mrf.mxu0 }
 0x1b5   :  { %v2718_v54 = vpop.f32.mrf.mxu0  ;;  %v1090_v55 = vpop.f32.mrf.mxu1 }
 0x1b6   :  { %v1091_v57 = vadd.f32 %v1090_v55, %v1002_v52  ;;  %v3053_v52 = vld [vmem:[#allocation10 + $0x50] ss:$8 sps:$4 sm:$0xff]   ;;  %v3056_v54 = vld [vmem:[#allocation10 + $0x40] ss:$8 sps:$4 sm:$0xff]  }
 0x1b7   :  { %v1005_v58 = vpop.f32.mrf.mxu0  ;;  %v2738_v59 = vpop.f32.mrf.mxu1  ;;  %v3059_v55 = vld [vmem:[#allocation10 + $0x30] ss:$8 sps:$4 sm:$0xff]  }
 0x1b8   :  { %v1104_v60 = vadd.f32 %v2342_v56, %v1091_v57  ;;  %v3061_v56 = vld [vmem:[#allocation10 + $0x34] ss:$8 sps:$4 sm:$0xff]   ;;  %v3064_v57 = vld [vmem:[#allocation10 + $0x24] ss:$8 sps:$4 sm:$0xff]   ;;  %v3062_v58 = vld [vmem:[#allocation10 + $0x20] ss:$8 sps:$4 sm:$0xff]  }
 0x1b9   :  { %v2719_v61 = vpop.f32.mrf.mxu0  ;;  %v1093_v62 = vpop.f32.mrf.mxu1  ;;  %v3372_v59 = vmov 0  }
 0x1ba   :  { %v2345_v63 = vmul.f32 -1.442695, %v1104_v60  ;;  %2179 = vmatprep.mubr.bf16.mxu0 %v3372_v59  ;;  %v3067_v60 = vld [vmem:[#allocation10 + $0x14] ss:$8 sps:$4 sm:$0xff]   ;;  %v3065_v61 = vld [vmem:[#allocation10 + $0x10] ss:$8 sps:$4 sm:$0xff]  }
 0x1bb   :  { %v2739_v0 = vpop.f32.mrf.mxu1  ;;  %v3070_v62 = vld [vmem:[#allocation10 + $0x4] ss:$8 sps:$4 sm:$0xff]  }
 0x1bc   :  { %3081 = vpow2.f32 %v2345_v63 }
 0x1bd   :  { %3083 = vtanh.f32 %v1126_v49  ;;  %v3047_v49 = vld [vmem:[#allocation10 + $0x70] ss:$8 sps:$4 sm:$0xff]  }
 0x1be   :  { %2148 = vmatpush1.bf16.msra.mxu0 %v3047_v49 }
 0x1c9   :  { %v3082_v2 = vpop.eup %3081 }
 0x1ca   :  { %v1121_v3 = vadd.f32 1.0, %v3082_v2  ;;  %v3084_v4 = vpop.eup %3083  ;;  %v3068_v2 = vld [vmem:[#allocation10] ss:$8 sps:$4 sm:$0xff]  }
 0x1cc   :  { %3085 = vrcp.f32 %v1121_v3 }
 0x1d3   :  { %v3707_v23 = vpop.f32.mrf.mxu0 }
 0x1d5   :  { %v2758_v24 = vpop.f32.mrf.mxu0 }
 0x1d7   :  { %v1254_v26 = vpop.f32.mrf.mxu0 }
 0x1d9   :  { %v3086_v5 = vpop.eup %3085  ;;  %v2759_v27 = vpop.f32.mrf.mxu0 }
 0x1da   :  { %v1128_v6 = vmul.f32 %v3086_v5, %v3084_v4 }
 0x1dc   :  { %v3685_v8 = vpack.c.bf16 %v1128_v6, %v1128_v6  ;;  %1129 = vst [vmem:[#allocation19] sm:$0xff] %v1128_v6 }
 0x1de   :  { %2777 = vmatmul.mubr.bf16.vlgmr.msra.gmra.mxu1 %v3685_v8 }
 0x1df   :  { %2801 = vmatpush3.bf16.msra.mxu1 %v3001_v7  ;;  %2816 = vmatprep.mubr.msk.bf16.mxu1 %vm3371_vm0, %v3370_v1 }
 0x1e0   :  { %2802 = vmatprep.subr.bf16.mxu1 %v3370_v1 }
 0x1e3   :  { %2803 = vmatpush3.bf16.msra.mxu1 %v3003_v9  ;;  %v2380_v9 = vld [vmem:[%s3770_s11 + $0x1] ss:$0 sm:$0xff] }
 0x1e4   :  { %2804 = vmatprep.subr.bf16.mxu1 %v3370_v1 }
 0x1e7   :  { %2805 = vmatpush3.bf16.msra.mxu1 %v3005_v44 }
 0x1e8   :  { %2806 = vmatprep.subr.bf16.mxu1 %v3370_v1 }
 0x1eb   :  { %2807 = vmatpush3.bf16.msra.mxu1 %v3007_v10  ;;  %v2362_v10 = vld [vmem:[%s3770_s11] ss:$0 sm:$0xff] }
 0x1ec   :  { %2808 = vmatprep.subr.bf16.mxu1 %v3370_v1 }
 0x1ef   :  { %2809 = vmatpush3.bf16.msra.mxu1 %v3009_v11 }
 0x1f0   :  { %2810 = vmatprep.subr.bf16.mxu1 %v3370_v1 }
 0x1f3   :  { %2811 = vmatpush3.bf16.msra.mxu1 %v3011_v12  ;;  %v1469_v35 = vpop.f32.mrf.mxu0 }
 0x1f4   :  { %2812 = vmatprep.subr.bf16.mxu1 %v3370_v1 }
 0x1f5   :  { %v2798_v36 = vpop.f32.mrf.mxu0 }
 0x1f7   :  { %2813 = vmatpush3.bf16.msra.mxu1 %v3013_v13  ;;  %v1472_v37 = vpop.f32.mrf.mxu0 }
 0x1f8   :  { %2814 = vmatprep.subr.bf16.mxu1 %v3370_v1 }
 0x1f9   :  { %v2799_v38 = vpop.f32.mrf.mxu0 }
 0x1fb   :  { %2815 = vmatpush3.bf16.msra.mxu1 %v3015_v14 }
 0x1fc   :  { %2840 = vmatprep.subr.bf16.mxu1 %v3370_v1 }
 0x1fe   :  { %2817 = vmatmul.mubr.bf16.vlgmr.msra.gmra.mxu1 %v3685_v8 }
 0x1ff   :  { %2841 = vmatpush3.bf16.msra.mxu1 %v3017_v15  ;;  %2856 = vmatprep.mubr.msk.bf16.mxu1 %vm3371_vm0, %v3370_v1 }
 0x200   :  { %2842 = vmatprep.subr.bf16.mxu1 %v3370_v1 }
 0x203   :  { %2843 = vmatpush3.bf16.msra.mxu1 %v3019_v16 }
 0x204   :  { %2844 = vmatprep.subr.bf16.mxu1 %v3370_v1 }
 0x207   :  { %2845 = vmatpush3.bf16.msra.mxu1 %v3021_v17 }
 0x208   :  { %2846 = vmatprep.subr.bf16.mxu1 %v3370_v1 }
 0x20b   :  { %2847 = vmatpush3.bf16.msra.mxu1 %v3023_v18 }
 0x20c   :  { %2848 = vmatprep.subr.bf16.mxu1 %v3370_v1 }
 0x20f   :  { %2849 = vmatpush3.bf16.msra.mxu1 %v3025_v19 }
 0x210   :  { %2850 = vmatprep.subr.bf16.mxu1 %v3370_v1 }
 0x213   :  { %2851 = vmatpush3.bf16.msra.mxu1 %v3027_v20  ;;  %v3722_v39 = vpop.f32.mrf.mxu0 }
 0x214   :  { %2852 = vmatprep.subr.bf16.mxu1 %v3370_v1 }
 0x215   :  { %v2838_v40 = vpop.f32.mrf.mxu0 }
 0x217   :  { %2853 = vmatpush3.bf16.msra.mxu1 %v3029_v21  ;;  %v1691_v41 = vpop.f32.mrf.mxu0  ;;  %v2398_v21 = vld [vmem:[%s3770_s11 + $0x2] ss:$0 sm:$0xff] }
 0x218   :  { %2854 = vmatprep.subr.bf16.mxu1 %v3370_v1 }
 0x219   :  { %v2839_v42 = vpop.f32.mrf.mxu0 }
 0x21b   :  { %2855 = vmatpush3.bf16.msra.mxu1 %v3031_v22 }
 0x21c   :  { %2880 = vmatprep.subr.bf16.mxu1 %v3370_v1 }
 0x21e   :  { %2857 = vmatmul.mubr.bf16.vlgmr.msra.gmra.mxu1 %v3685_v8 }
 0x21f   :  { %2881 = vmatpush3.bf16.msra.mxu1 %v3033_v25  ;;  %2896 = vmatprep.mubr.msk.bf16.mxu1 %vm3371_vm0, %v3370_v1 }
 0x220   :  { %2882 = vmatprep.subr.bf16.mxu1 %v3370_v1 }
 0x223   :  { %2883 = vmatpush3.bf16.msra.mxu1 %v3035_v28  ;;  %v1134_v28 = vld [vmem:[#allocation9 + $0x8] sm:$0xff] }
 0x224   :  { %2884 = vmatprep.subr.bf16.mxu1 %v3370_v1 }
 0x227   :  { %2885 = vmatpush3.bf16.msra.mxu1 %v3037_v29 }
 0x228   :  { %2886 = vmatprep.subr.bf16.mxu1 %v3370_v1 }
 0x22b   :  { %2887 = vmatpush3.bf16.msra.mxu1 %v3039_v30 }
 0x22c   :  { %2888 = vmatprep.subr.bf16.mxu1 %v3370_v1 }
 0x22f   :  { %2889 = vmatpush3.bf16.msra.mxu1 %v3041_v31 }
 0x230   :  { %2890 = vmatprep.subr.bf16.mxu1 %v3370_v1 }
 0x233   :  { %2891 = vmatpush3.bf16.msra.mxu1 %v3043_v32  ;;  %v3724_v43 = vpop.f32.mrf.mxu0 }
 0x234   :  { %2892 = vmatprep.subr.bf16.mxu1 %v3370_v1 }
 0x235   :  { %v2878_v45 = vpop.f32.mrf.mxu0 }
 0x237   :  { %2893 = vmatpush3.bf16.msra.mxu1 %v3045_v33  ;;  %v1910_v46 = vpop.f32.mrf.mxu0 }
 0x238   :  { %2894 = vmatprep.subr.bf16.mxu1 %v3370_v1  ;;  %v3052_v1 = vld [vmem:[#allocation10 + $0x64] ss:$8 sps:$4 sm:$0xff]  }
 0x239   :  { %v2879_v47 = vpop.f32.mrf.mxu0  ;;  %2149 = vmatprep.subr.bf16.mxu0 %v3052_v1  ;;  %v2057_v1 = vlaneseq }
 0x23a   :  { %2150 = vmatpush1.bf16.msra.mxu0 %v3050_v50 }
 0x23b   :  { %2895 = vmatpush3.bf16.msra.mxu1 %v3046_v34  ;;  %2151 = vmatprep.subr.bf16.mxu0 %v3055_v51  ;;  %v2058_v50 = vshrl.u32 %v2057_v1, 7 }
 0x23d   :  { %v2059_v51 = vsub.s32 0, %v2058_v50 }
 0x23e   :  { %2897 = vmatmul.mubr.bf16.vlgmr.msra.gmra.mxu1 %v3685_v8  ;;  %2152 = vmatpush1.bf16.msra.mxu0 %v3053_v52  ;;  %v2055_v52 = vld [vmem:[%s3764_s5] sm:$0x3]  ;;  %s3373_s5 = smov [#allocation19]  }
 0x23f   :  { %2153 = vmatprep.subr.bf16.mxu0 %v3058_v53  ;;  %v2060_v53 = vrot.slane %v2055_v52, %v2059_v51  ;;  %s2221_s29 = sshll.u32 %s3373_s5, 4  ;;  %s2222_s29 = int_to_ptr.vmem [resolvable:$true] %s2221_s29 }
 0x240   :  { %s3281_s4 = scalar_lea.vmem %s2222_s29, 256  ;;  %p3286_p4 = scmp.lt.s32.totalorder %s2222_s29, %s2222_s29 }
 0x241   :  { %p3282_p3 = scmp.ne.s32.totalorder %s2222_s29, %s3281_s4  ;;  %p3287_p5 = scmp.lt.s32.totalorder %s3281_s4, %s3281_s4 }
 0x242   :  { %2154 = vmatpush1.bf16.msra.mxu0 %v3056_v54 }
 0x243   :  { %2155 = vmatprep.subr.bf16.mxu0 %v3061_v56  ;;  %p3288_p6 = por %p3287_p5, %p3286_p4 }
 0x245   :  { %p3289_p7 = pnand %p3288_p6, %p3282_p3 }
 0x246   :  { %2156 = vmatpush1.bf16.msra.mxu0 %v3059_v55 }
 0x247   :  { %2157 = vmatprep.subr.bf16.mxu0 %v3064_v57 }
 0x24a   :  { %2158 = vmatpush1.bf16.msra.mxu0 %v3062_v58 }
 0x24b   :  { %2159 = vmatprep.subr.bf16.mxu0 %v3067_v60 }
 0x24e   :  { %2160 = vmatpush1.bf16.msra.mxu0 %v3065_v61 }
 0x24f   :  { %2161 = vmatprep.subr.bf16.mxu0 %v3070_v62 }
 0x252   :  { %2162 = vmatpush1.bf16.msra.mxu0 %v3068_v2 }
 0x29e   :  { %v1339_v63 = vpop.f32.mrf.mxu1 }
 0x29f   :  { %v1340_v8 = vadd.f32 %v1339_v63, %v3707_v23 }
 0x2a0   :  { %v2778_v0 = vpop.f32.mrf.mxu1 }
 0x2a1   :  { %v1352_v13 = vadd.f32 %v2362_v10, %v1340_v8 }
 0x2a2   :  { %v1342_v3 = vpop.f32.mrf.mxu1 }
 0x2a3   :  { %v2417_v15 = vmul.f32 -1.442695, %v1352_v13 }
 0x2a4   :  { %v2779_v4 = vpop.f32.mrf.mxu1 }
 0x2be   :  { %v1557_v5 = vpop.f32.mrf.mxu1 }
 0x2bf   :  { %v1558_v7 = vadd.f32 %v1557_v5, %v1469_v35  ;;  %v2416_v35 = vld [vmem:[%s3770_s11 + $0x3] ss:$0 sm:$0xff] }
 0x2c0   :  { %v2818_v6 = vpop.f32.mrf.mxu1 }
 0x2c1   :  { %v1571_v12 = vadd.f32 %v2380_v9, %v1558_v7 }
 0x2c2   :  { %v1560_v44 = vpop.f32.mrf.mxu1 }
 0x2c3   :  { %v2418_v14 = vmul.f32 -1.442695, %v1571_v12 }
 0x2c4   :  { %v2819_v11 = vpop.f32.mrf.mxu1 }
 0x2c5   :  { %3087 = vpow2.f32 %v2418_v14 }
 0x2c6   :  { %3089 = vpow2.f32 %v2417_v15 }
 0x2d2   :  { %v3088_v16 = vpop.eup %3087 }
 0x2d3   :  { %v3090_v17 = vpop.eup %3089  ;;  %v2019_v18 = vadd.f32 1.0, %v3088_v16 }
 0x2d4   :  { %v2013_v19 = vadd.f32 1.0, %v3090_v17 }
 0x2d5   :  { %3091 = vrcp.f32 %v2019_v18 }
 0x2d6   :  { %3093 = vrcp.f32 %v2013_v19 }
 0x2de   :  { %v1776_v20 = vpop.f32.mrf.mxu1 }
 0x2df   :  { %v1777_v22 = vadd.f32 %v1776_v20, %v3722_v39 }
 0x2e0   :  { %v2858_v23 = vpop.f32.mrf.mxu1 }
 0x2e1   :  { %v1790_v24 = vadd.f32 %v2398_v21, %v1777_v22 }
 0x2e2   :  { %v1779_v25 = vpop.f32.mrf.mxu1  ;;  %v3092_v27 = vpop.eup %3091 }
 0x2e3   :  { %3095 = vtanh.f32 %v1790_v24  ;;  %v3094_v29 = vpop.eup %3093  ;;  %v2029_v31 = vmul.f32 %v3092_v27, %v1134_v28 }
 0x2e4   :  { %v2859_v26 = vpop.f32.mrf.mxu1 }
 0x2f0   :  { %v3096_v30 = vpop.eup %3095 }
 0x2f1   :  { %v2030_v32 = vmul.f32 %v3096_v30, %v3094_v29 }
 0x2f3   :  { %v2031_v33 = vadd.f32 %v2030_v32, %v2029_v31 }
 0x2f5   :  { %2037 = vst [vmem:[#allocation21 + $0x8] sm:$0xff] %v2031_v33 }
 0x2fe   :  { %v1995_v34 = vpop.f32.mrf.mxu1 }
 0x2ff   :  { %v1996_v36 = vadd.f32 %v1995_v34, %v3724_v43  ;;  %v2063_v43 = vsub.s32 1, %v2058_v50 }
 0x300   :  { %v2898_v37 = vpop.f32.mrf.mxu1 }
 0x301   :  { %v2009_v38 = vadd.f32 %v2416_v35, %v1996_v36  ;;  %v2064_v54 = vrot.slane %v2055_v52, %v2063_v43 }
 0x302   :  { %v1998_v39 = vpop.f32.mrf.mxu1 }
 0x303   :  { %v2419_v40 = vmul.f32 -1.442695, %v2009_v38 }
 0x304   :  { %v2899_v41 = vpop.f32.mrf.mxu1 }
 0x305   :  { %3097 = vpow2.f32 %v2419_v40 }
 0x306   :  { %3099 = vtanh.f32 %v2031_v33 }
 0x312   :  { %v3098_v42 = vpop.eup %3097 }
 0x313   :  { %v2026_v45 = vadd.f32 1.0, %v3098_v42  ;;  %v3100_v46 = vpop.eup %3099 }
 0x315   :  { %3101 = vrcp.f32 %v2026_v45 }
 0x322   :  { %v3102_v47 = vpop.eup %3101 }
 0x323   :  { %v2033_v48 = vmul.f32 %v3102_v47, %v3100_v46 }
 0x325   :  { %v2038_v49 = vpack.c.bf16 %v2033_v48, %v2033_v48  ;;  %2035 = vst [vmem:[#allocation19 + $0x8] sm:$0xff] %v2033_v48 }
 0x327   :  { %2180 = vmatmul.mubr.bf16.vlgmr.msra.gmra.mxu0 %v2038_v49 }
 0x3e7   :  { %v2181_v55 = vpop.f32.mrf.mxu0 }
 0x3e8   :  { %v2182_v57 = vadd.f32 %v2181_v55, %v2060_v53 }
 0x3e9   :  { %v2183_v56 = vpop.f32.mrf.mxu0 }
 0x3ea   :  { %v2184_v58 = vadd.f32 %v2183_v56, %v2064_v54 }
 0x3eb   :  { %v2185_v59 = vpop.f32.mrf.mxu0 }
 0x3ec   :  { %v2188_v60 = vmax.f32 %v2182_v57, %v2184_v58 }
 0x3ed   :  { %v2186_v61 = vpop.f32.mrf.mxu0 }
 0x3ee   :  { %2189 = vmax.xlane.f32.xlu0 %v2188_v60 }
 0x477   :  { %v2190_v62 = vpop.xlane.xlu0 %2189 }
 0x478   :  { %v2191_v63 = vsub.f32 %v2182_v57, %v2190_v62  ;;  %v2192_v0 = vsub.f32 %v2184_v58, %v2190_v62 }
 0x47a   :  { %v2193_v2 = vmul.f32 1.442695, %v2191_v63  ;;  %v2195_v3 = vmul.f32 1.442695, %v2192_v0 }
 0x47c   :  { %3103 = vpow2.f32 %v2193_v2 }
 0x47d   :  { %3105 = vpow2.f32 %v2195_v3 }
 0x489   :  { %v3104_v4 = vpop.eup %3103 }
 0x48a   :  { %v3106_v5 = vpop.eup %3105 }
 0x48b   :  { %v2197_v6 = vadd.f32 %v3106_v5, %v3104_v4 }
 0x48d   :  { %2198 = vadd.xlane.f32.xlu0 %v2197_v6 }
 0x48e   :  { %3292 = shalt.err (!%p3289_p7)
}
 0x48f   :  { %2227 = dma.vmem_to_hbm [thread:$0]  %s2222_s29, 256, %s3772_s13, [#allocation20], %s3359_s18, %s3359_s18, %s3360_s19  }
 0x490   :  { %s3374_s0 = smov [#allocation21]  }
 0x491   :  { %s2233_s17 = sshll.u32 %s3374_s0, 4  ;;  %s2234_s17 = int_to_ptr.vmem [resolvable:$true] %s2233_s17 }
 0x492   :  { %s3301_s3 = scalar_lea.vmem %s2234_s17, 256  ;;  %p3306_p9 = scmp.lt.s32.totalorder %s2234_s17, %s2234_s17 }
 0x493   :  { %p3302_p8 = scmp.ne.s32.totalorder %s2234_s17, %s3301_s3  ;;  %p3307_p10 = scmp.lt.s32.totalorder %s3301_s3, %s3301_s3 }
 0x495   :  { %p3308_p11 = por %p3307_p10, %p3306_p9 }
 0x497   :  { %p3309_p12 = pnand %p3308_p11, %p3302_p8 }
 0x499   :  { %3312 = shalt.err (!%p3309_p12)
}
 0x49a   :  { %2239 = dma.vmem_to_hbm [thread:$0]  %s2234_s17, 256, %s3773_s14, [#allocation20], %s3359_s18, %s3359_s18, %s3360_s19  }
 0x49b   :  { %s3375_s13 = smov [#allocation18]  }
 0x49c   :  { %s2212_s22 = sshll.u32 %s3375_s13, 4  ;;  %s2213_s22 = int_to_ptr.vmem [resolvable:$true] %s2212_s22 }
 0x49d   :  { %s3321_s23 = scalar_lea.vmem %s2213_s22, 256  ;;  %p3326_p0 = scmp.lt.s32.totalorder %s2213_s22, %s2213_s22 }
 0x49e   :  { %p3322_p13 = scmp.ne.s32.totalorder %s2213_s22, %s3321_s23  ;;  %p3327_p1 = scmp.lt.s32.totalorder %s3321_s23, %s3321_s23 }
 0x4a0   :  { %p3328_p2 = por %p3327_p1, %p3326_p0 }
 0x4a2   :  { %p3329_p3 = pnand %p3328_p2, %p3322_p13 }
 0x516   :  { %v2199_v7 = vpop.xlane.xlu0 %2198 }
 0x517   :  { %3107 = vlog2.f32 %v2199_v7 }
 0x524   :  { %v3108_v8 = vpop.eup %3107 }
 0x525   :  { %v2201_v9 = vmul.f32 0.6931472, %v3108_v8 }
 0x527   :  { %v2202_v44 = vsub.f32 %v2191_v63, %v2201_v9  ;;  %v2203_v10 = vsub.f32 %v2192_v0, %v2201_v9 }
 0x529   :  { %2204 = vst [vmem:[#allocation18] sm:$0xff] %v2202_v44  ;;  %2205 = vst [vmem:[#allocation18 + $0x8] sm:$0xff] %v2203_v10 }
 0x52a   :  { %3332 = shalt.err (!%p3329_p3)
}
 0x52b   :  { %2215 = dma.vmem_to_hbm [thread:$0]  %s2213_s22, 256, %s3771_s12, [#allocation4]  }
 0x52c   :  { %3353 = dma.done.wait [#allocation4], 256  }
 0x52d   :  { %3354 = vsyncadd [#allocation4], 4294967040 }
 0x52e   :  { %3355 = dma.done.wait [#allocation20], 512  }
 0x52f   :  { %3356 = vsyncadd [#allocation20], 4294966784 }
 0x530   :  { %2249 = vsyncpa [#allocation3], 1 }
 0x531   :  { %2250 = vsyncpa [#allocation8], 1 }
 0x532   :  { %2251 = vsyncpa [#allocation11], 1 }
 0x533   :  { %2252 = vsyncpa [#allocation14], 1 }
 0x534   :  { %2253 = vsyncpa [#allocation17], 1 }
 0x535   :  { %2254 = vsyncpa [#allocation4], 1 }
 0x536   :  { %2255 = vsyncpa [#allocation20], 1 }
 0x537   :  { %2256 = vsyncpa [#allocation5], 1 }

</bundles_post_ra>
